<compile_context>
chip_gen: v7x
topology: tpu7x:2x2x1
jax: 0.10.0
libtpu: 0.0.40
codegen_flags: <defaults>
</compile_context>

<pallas_src>
import jax
import jax.numpy as jnp
from jax.experimental import pallas as pl
from jax.experimental.pallas import tpu as pltpu


def mlp_kernel(x_ref, w1_ref, b1_ref, w2_ref, b2_ref, w3_ref, b3_ref, o_ref):
    # Layer 1: (TB,1280) @ (1280,512) bf16 on MXU, f32 accumulate, + b1, ReLU
    x = x_ref[...]
    if x.dtype != jnp.bfloat16:          # static (trace-time) branch; bf16 producers skip it
        x = x.astype(jnp.bfloat16)
    h1 = jnp.dot(x, w1_ref[...], preferred_element_type=jnp.float32)
    h1 = jnp.maximum(h1 + b1_ref[...], 0.0)
    # Dropout(0.3) in eval mode == identity
    # Layer 2: (TB,512) @ (512,256) bf16 on MXU, f32 accumulate, + b2, ReLU
    h2 = jnp.dot(h1.astype(jnp.bfloat16), w2_ref[...], preferred_element_type=jnp.float32)
    h2 = jnp.maximum(h2 + b2_ref[...], 0.0)
    # Layer 3: N=1 -> skip the MXU. Broadcast-multiply by the w3 row and reduce over
    # lanes (VPU multiply + XLU reduce); b3 comes from SMEM as a scalar.
    out = jnp.sum(h2 * w3_ref[...], axis=-1, keepdims=True) + b3_ref[0, 0]
    o_ref[...] = out.astype(o_ref.dtype)


def _pick_tb(B, tb_max=512):
    """Batch tile: multiple of 8 sublanes, <= tb_max, >=2 grid steps when B is large
    enough to split across v7x's two TensorCores, padding-minimizing."""
    b8 = max(8, ((B + 7) // 8) * 8)
    tb = min(tb_max, b8)
    nsteps = (b8 + tb - 1) // tb
    if nsteps < 2 and b8 >= 256:
        nsteps = 2                       # force a 2-way split (each half still >=128 MXU rows)
    # Re-balance the tile for the chosen step count to minimize padding.
    tb = ((((b8 + nsteps - 1) // nsteps) + 7) // 8) * 8
    return tb


def net_forward(x, params, *, tb_max=512):
    """x: (B, 1280) bf16 (preferred) or f32.
    params: (w1, b1, w2, b2, w3_row, b3) with w3_row shaped (1, 256), b3 shaped (1, 1)."""
    w1, b1, w2, b2, w3_row, b3 = params
    # Weights to bf16 (halves resident weight footprint / initial DMA); biases/w3 stay f32.
    w1 = w1.astype(jnp.bfloat16)
    w2 = w2.astype(jnp.bfloat16)

    B, D = x.shape
    assert D == 1280, D
    tb = _pick_tb(B, tb_max)
    Bp = ((B + tb - 1) // tb) * tb
    if Bp != B:
        x = jnp.pad(x, ((0, Bp - B), (0, 0)))
    grid = (Bp // tb,)

    # Fetched once (constant block index) -> VMEM-resident across the batch grid.
    resident = lambda arr: pl.BlockSpec(arr.shape, lambda i: (0, 0))

    out = pl.pallas_call(
        mlp_kernel,
        out_shape=jax.ShapeDtypeStruct((Bp, 1), jnp.float32),
        grid=grid,
        in_specs=[
            pl.BlockSpec((tb, 1280), lambda i: (i, 0)),          # x tile, pipelined over grid
            resident(w1), resident(b1),
            resident(w2), resident(b2),
            resident(w3_row),
            pl.BlockSpec(memory_space=pltpu.MemorySpace.SMEM),   # b3 scalar in SMEM
        ],
        out_specs=pl.BlockSpec((tb, 1), lambda i: (i, 0)),
        compiler_params=pltpu.CompilerParams(
            dimension_semantics=("parallel",),   # 2-TensorCore split on v7x; no-op on v5e/v6e
            vmem_limit_bytes=32 * 1024 * 1024,
        ),
    )(x, w1, b1, w2, b2, w3_row, b3)
    return out[:B]


def init_params(key):
    """Deterministic init mimicking nn.Linear default: U(-1/sqrt(fan_in), 1/sqrt(fan_in))."""
    def linear(key, fan_in, fan_out):
        kw, kb = jax.random.split(key)
        bound = 1.0 / jnp.sqrt(fan_in)
        w = jax.random.uniform(kw, (fan_in, fan_out), jnp.float32, -bound, bound)
        b = jax.random.uniform(kb, (1, fan_out), jnp.float32, -bound, bound)
        return w, b

    k1, k2, k3 = jax.random.split(key, 3)
    w1, b1 = linear(k1, 1280, 512)
    w2, b2 = linear(k2, 512, 256)
    w3, b3 = linear(k3, 256, 1)
    w3_row = w3.T                      # (1, 256): stored as a row for the VPU reduce in layer 3
    return (w1, b1, w2, b2, w3_row, b3)


def reference_forward(x, params):
    """Pure-JAX reference using identically bf16-quantized weights/activations (f32 accum).
    NOTE: validates the kernel against a bf16 reference, not the original f32 PyTorch model."""
    w1, b1, w2, b2, w3_row, b3 = params
    w1b = w1.astype(jnp.bfloat16)
    w2b = w2.astype(jnp.bfloat16)
    h1 = jnp.maximum(
        jnp.dot(x.astype(jnp.bfloat16), w1b, preferred_element_type=jnp.float32) + b1, 0.0)
    h2 = jnp.maximum(
        jnp.dot(h1.astype(jnp.bfloat16), w2b, preferred_element_type=jnp.float32) + b2, 0.0)
    return jnp.sum(h2 * w3_row, axis=-1, keepdims=True) + b3


if __name__ == "__main__":
    key = jax.random.PRNGKey(0)
    k_x, k_p = jax.random.split(key)
    params = init_params(k_p)

    # Small-batch check.  Upstream producer emits bf16 activations (halves x HBM traffic).
    B = 8
    x = jax.random.normal(k_x, (B, 1280), jnp.float32).astype(jnp.bfloat16)
    out = jax.block_until_ready(net_forward(x, params))
    ref = reference_forward(x, params)
    assert out.shape == (B, 1), out.shape
    assert jnp.allclose(out, ref, atol=2e-2, rtol=2e-2), "mismatch vs reference (B=8)"

    # Larger-batch check: exercises batch padding and a multi-step grid
    # (forced >=2 steps -> real 2-TensorCore split on v7x).
    B2 = 300
    x2 = jax.random.normal(k_x, (B2, 1280), jnp.float32).astype(jnp.bfloat16)
    out2 = jax.block_until_ready(net_forward(x2, params))
    ref2 = reference_forward(x2, params)
    assert out2.shape == (B2, 1), out2.shape
    assert jnp.allclose(out2, ref2, atol=2e-2, rtol=2e-2), "mismatch vs reference (B=300)"

    print("KERNEL_OK")
</pallas_src>

<mosaic_0001>
module attributes {stable_mosaic.version = 11 : i64} {
  func.func @mlp_kernel(%arg0: i32, %arg1: memref<8x1280xbf16, #tpu.memory_space<vmem>>, %arg2: memref<1280x512xbf16, #tpu.memory_space<vmem>>, %arg3: memref<1x512xf32, #tpu.memory_space<vmem>>, %arg4: memref<512x256xbf16, #tpu.memory_space<vmem>>, %arg5: memref<1x256xf32, #tpu.memory_space<vmem>>, %arg6: memref<1x256xf32, #tpu.memory_space<vmem>>, %arg7: memref<1x1xf32, #tpu.memory_space<smem>>, %arg8: memref<8x1xf32, #tpu.memory_space<vmem>>) attributes {dimension_semantics = [#tpu.dimension_semantics<parallel>], iteration_bounds = array<i64: 1>, scalar_prefetch = 0 : i64, scratch_operands = 0 : i64, tpu.core_type = #tpu.core_type<tc>, window_params = [{transform_indices = @transform_0, window_bounds = array<i64: 8, 1280>}, {pipeline_mode = #tpu.pipeline_mode<synchronous>, transform_indices = @transform_1, window_bounds = array<i64: 1280, 512>}, {pipeline_mode = #tpu.pipeline_mode<synchronous>, transform_indices = @transform_2, window_bounds = array<i64: 1, 512>}, {pipeline_mode = #tpu.pipeline_mode<synchronous>, transform_indices = @transform_3, window_bounds = array<i64: 512, 256>}, {pipeline_mode = #tpu.pipeline_mode<synchronous>, transform_indices = @transform_4, window_bounds = array<i64: 1, 256>}, {pipeline_mode = #tpu.pipeline_mode<synchronous>, transform_indices = @transform_5, window_bounds = array<i64: 1, 256>}, {transform_indices = @transform_6, window_bounds = array<i64: 1, 1>}, {transform_indices = @transform_7, window_bounds = array<i64: 8, 1>}]} {
    %c0 = arith.constant 0 : index
    %c0_0 = arith.constant 0 : index
    %0 = vector.load %arg1[%c0, %c0_0] : memref<8x1280xbf16, #tpu.memory_space<vmem>>, vector<8x1280xbf16>
    %c0_1 = arith.constant 0 : index
    %c0_2 = arith.constant 0 : index
    %1 = vector.load %arg2[%c0_1, %c0_2] : memref<1280x512xbf16, #tpu.memory_space<vmem>>, vector<1280x512xbf16>
    %cst = arith.constant dense<0.000000e+00> : vector<8x512xf32>
    %2 = tpu.matmul %0, %1, %cst {dimension_numbers = #tpu.dot_dimension_numbers<[1], [0], [0], [1], [0, 0, 1, 1], [], []>} : vector<8x1280xbf16>, vector<1280x512xbf16>, vector<8x512xf32> -> vector<8x512xf32>
    %c0_3 = arith.constant 0 : index
    %c0_4 = arith.constant 0 : index
    %3 = vector.load %arg3[%c0_3, %c0_4] : memref<1x512xf32, #tpu.memory_space<vmem>>, vector<1x512xf32>
    %4 = vector.broadcast %3 : vector<1x512xf32> to vector<8x512xf32>
    %5 = arith.addf %2, %4 : vector<8x512xf32>
    %cst_5 = arith.constant 0.000000e+00 : f32
    %6 = vector.broadcast %cst_5 : f32 to vector<8x512xf32>
    %7 = arith.maximumf %5, %6 : vector<8x512xf32>
    %8 = arith.truncf %7 : vector<8x512xf32> to vector<8x512xbf16>
    %c0_6 = arith.constant 0 : index
    %c0_7 = arith.constant 0 : index
    %9 = vector.load %arg4[%c0_6, %c0_7] : memref<512x256xbf16, #tpu.memory_space<vmem>>, vector<512x256xbf16>
    %cst_8 = arith.constant dense<0.000000e+00> : vector<8x256xf32>
    %10 = tpu.matmul %8, %9, %cst_8 {dimension_numbers = #tpu.dot_dimension_numbers<[1], [0], [0], [1], [0, 0, 1, 1], [], []>} : vector<8x512xbf16>, vector<512x256xbf16>, vector<8x256xf32> -> vector<8x256xf32>
    %c0_9 = arith.constant 0 : index
    %c0_10 = arith.constant 0 : index
    %11 = vector.load %arg5[%c0_9, %c0_10] : memref<1x256xf32, #tpu.memory_space<vmem>>, vector<1x256xf32>
    %12 = vector.broadcast %11 : vector<1x256xf32> to vector<8x256xf32>
    %13 = arith.addf %10, %12 : vector<8x256xf32>
    %cst_11 = arith.constant 0.000000e+00 : f32
    %14 = vector.broadcast %cst_11 : f32 to vector<8x256xf32>
    %15 = arith.maximumf %13, %14 : vector<8x256xf32>
    %c0_12 = arith.constant 0 : index
    %c0_13 = arith.constant 0 : index
    %16 = vector.load %arg6[%c0_12, %c0_13] : memref<1x256xf32, #tpu.memory_space<vmem>>, vector<1x256xf32>
    %17 = vector.broadcast %16 : vector<1x256xf32> to vector<8x256xf32>
    %18 = arith.mulf %15, %17 : vector<8x256xf32>
    %cst_14 = arith.constant dense<0.000000e+00> : vector<8xf32>
    %19 = vector.multi_reduction <add>, %18, %cst_14 [1] : vector<8x256xf32> to vector<8xf32>
    %20 = vector.shape_cast %19 : vector<8xf32> to vector<8x1xf32>
    %c0_15 = arith.constant 0 : index
    %c0_16 = arith.constant 0 : index
    %21 = memref.load %arg7[%c0_15, %c0_16] : memref<1x1xf32, #tpu.memory_space<smem>>
    %22 = vector.broadcast %21 : f32 to vector<8x1xf32>
    %23 = arith.addf %20, %22 : vector<8x1xf32>
    %c0_17 = arith.constant 0 : index
    %c0_18 = arith.constant 0 : index
    %24 = vector.load %arg8[%c0_17, %c0_18] : memref<8x1xf32, #tpu.memory_space<vmem>>, vector<8x1xf32>
    tpu.vector_store %arg8[%c0_17, %c0_18], %23 {strides = array<i32>} : memref<8x1xf32, #tpu.memory_space<vmem>>, vector<8x1xf32>,
    return
  }
  func.func @transform_0(%arg0: i32) -> (i32, i32) {
    %c0_i32 = arith.constant 0 : i32
    %c0_i32_0 = arith.constant 0 : i32
    return %arg0, %c0_i32 : i32, i32
  }
  func.func @transform_1(%arg0: i32) -> (i32, i32) {
    %c0_i32 = arith.constant 0 : i32
    %c0_i32_0 = arith.constant 0 : i32
    %c0_i32_1 = arith.constant 0 : i32
    return %c0_i32, %c0_i32_0 : i32, i32
  }
  func.func @transform_2(%arg0: i32) -> (i32, i32) {
    %c0_i32 = arith.constant 0 : i32
    %c0_i32_0 = arith.constant 0 : i32
    %c0_i32_1 = arith.constant 0 : i32
    return %c0_i32, %c0_i32_0 : i32, i32
  }
  func.func @transform_3(%arg0: i32) -> (i32, i32) {
    %c0_i32 = arith.constant 0 : i32
    %c0_i32_0 = arith.constant 0 : i32
    %c0_i32_1 = arith.constant 0 : i32
    return %c0_i32, %c0_i32_0 : i32, i32
  }
  func.func @transform_4(%arg0: i32) -> (i32, i32) {
    %c0_i32 = arith.constant 0 : i32
    %c0_i32_0 = arith.constant 0 : i32
    %c0_i32_1 = arith.constant 0 : i32
    return %c0_i32, %c0_i32_0 : i32, i32
  }
  func.func @transform_5(%arg0: i32) -> (i32, i32) {
    %c0_i32 = arith.constant 0 : i32
    %c0_i32_0 = arith.constant 0 : i32
    %c0_i32_1 = arith.constant 0 : i32
    return %c0_i32, %c0_i32_0 : i32, i32
  }
  func.func @transform_6(%arg0: i32) -> (i32, i32) {
    %c0_i32 = arith.constant 0 : i32
    %c0_i32_0 = arith.constant 0 : i32
    %c0_i32_1 = arith.constant 0 : i32
    return %c0_i32, %c0_i32_0 : i32, i32
  }
  func.func @transform_7(%arg0: i32) -> (i32, i32) {
    %c0_i32 = arith.constant 0 : i32
    %c0_i32_0 = arith.constant 0 : i32
    return %arg0, %c0_i32 : i32, i32
  }
}

</mosaic_0001>

<bundles_post_ra>
// kernel: tpu_custom_call.1
= control target key start
LH: loop header
LB: loop body
LE: loop exit
PB: predicated region body
PF: predicated region fallthrough
CT: control target
= control target key end

     0   :  { %13 = vsyncpa [#allocation4], 0  ;;  %s4395_s0 = inlined_call_operand.hbm [shape: bf16[8,1280], index: 0, kind: input, shape index: {}]   ;;  %s4396_s1 = inlined_call_operand.hbm [shape: bf16[1280,512], index: 1, kind: input, shape index: {}]   ;;  %s4397_s2 = inlined_call_operand.hbm [shape: f32[1,512], index: 2, kind: input, shape index: {}]   ;;  %s4398_s3 = inlined_call_operand.hbm [shape: bf16[512,256], index: 3, kind: input, shape index: {}]   ;;  %s4399_s4 = inlined_call_operand.hbm [shape: f32[1,256], index: 4, kind: input, shape index: {}]   ;;  %s4400_s5 = inlined_call_operand.hbm [shape: f32[1,256], index: 5, kind: input, shape index: {}]   ;;  %s4401_s6 = inlined_call_operand.<no memory space> [shape: f32[1,1], index: 6, kind: input, shape index: {}]   ;;  %s4402_s7 = inlined_call_operand.vmem [shape: f32[8,1], index: 7, kind: output, shape index: {}]  }
   0x1   :  { %14 = vsyncpa [#allocation6], 0 }
   0x2   :  { %15 = vsyncpa [#allocation9], 0 }
   0x3   :  { %16 = vsyncpa [#allocation12], 0  ;;  %s4181_s24 = smov [#allocation5]   ;;  %s4041_s28 = scalar_lea.hbm %s4396_s1, 40960 }
   0x4   :  { %s32_s25 = sshll.u32 %s4181_s24, 4  ;;  %p4042_p0 = scmp.ne.s32.totalorder %s4396_s1, %s4041_s28  ;;  %s33_s25 = int_to_ptr.vmem [resolvable:$true] %s32_s25 }
   0x5   :  { %p4045_p1 = scmp.lt.u32.totalorder %s4041_s28, %s4396_s1 }
   0x7   :  { %p4047_p2 = pnand %p4045_p1, %p4042_p0 }
   0x9   :  { %4050 = shalt.err (!%p4047_p2)
}
   0xa   :  { %s4051_s10 = scalar_lea.vmem %s33_s25, 40960  ;;  %p4056_p4 = scmp.lt.s32.totalorder %s33_s25, %s33_s25 }
   0xb   :  { %p4052_p3 = scmp.ne.s32.totalorder %s33_s25, %s4051_s10  ;;  %p4057_p5 = scmp.lt.s32.totalorder %s4051_s10, %s4051_s10 }
   0xd   :  { %p4058_p6 = por %p4057_p5, %p4056_p4 }
   0xf   :  { %p4059_p7 = pnand %p4058_p6, %p4052_p3 }
  0x11   :  { %4062 = shalt.err (!%p4059_p7)
}
  0x12   :  { %s4182_s11 = smov 256   ;;  %s4183_s12 = smov 16  }
  0x13   :  { %38 = dma.hbm_to_vmem [thread:$0]  %s4396_s1, 40960, %s33_s25, [#allocation6], %s4182_s11, %s4182_s11, %s4183_s12  }
  0x14   :  { %s4184_s15 = smov [#allocation8]   ;;  %s4063_s19 = scalar_lea.hbm %s4398_s3, 8192 }
  0x15   :  { %s54_s16 = sshll.u32 %s4184_s15, 4  ;;  %p4064_p8 = scmp.ne.s32.totalorder %s4398_s3, %s4063_s19  ;;  %s55_s16 = int_to_ptr.vmem [resolvable:$true] %s54_s16 }
  0x16   :  { %p4067_p9 = scmp.lt.u32.totalorder %s4063_s19, %s4398_s3 }
  0x18   :  { %p4069_p10 = pnand %p4067_p9, %p4064_p8 }
  0x1a   :  { %4072 = shalt.err (!%p4069_p10)
}
  0x1b   :  { %s4073_s24 = scalar_lea.vmem %s55_s16, 8192  ;;  %p4078_p12 = scmp.lt.s32.totalorder %s55_s16, %s55_s16 }
  0x1c   :  { %p4074_p11 = scmp.ne.s32.totalorder %s55_s16, %s4073_s24  ;;  %p4079_p13 = scmp.lt.s32.totalorder %s4073_s24, %s4073_s24 }
  0x1e   :  { %p4080_p0 = por %p4079_p13, %p4078_p12 }
  0x20   :  { %p4081_p1 = pnand %p4080_p0, %p4074_p11 }
  0x22   :  { %4084 = shalt.err (!%p4081_p1)
}
  0x23   :  { %s4185_s1 = smov 128   ;;  %s4186_s25 = smov 8  }
  0x24   :  { %60 = dma.hbm_to_vmem [thread:$0]  %s4398_s3, 8192, %s55_s16, [#allocation9], %s4185_s1, %s4185_s1, %s4186_s25  }
  0x25   :  { %s4187_s28 = smov [#allocation3]   ;;  %s4188_s30 = smov [#allocation7]  }
  0x26   :  { %s23_s29 = sshll.u32 %s4187_s28, 4  ;;  %s45_s8 = sshll.u32 %s4188_s30, 4  ;;  %s24_s29 = int_to_ptr.vmem [resolvable:$true] %s23_s29  ;;  %s46_s8 = int_to_ptr.vmem [resolvable:$true] %s45_s8 }
  0x27   :  { %s4085_s11 = scalar_lea.hbm %s4395_s0, 640 }
  0x28   :  { %p4086_p2 = scmp.ne.s32.totalorder %s4395_s0, %s4085_s11  ;;  %p4089_p3 = scmp.lt.u32.totalorder %s4085_s11, %s4395_s0 }
  0x2a   :  { %p4091_p4 = pnand %p4089_p3, %p4086_p2 }
  0x2c   :  { %4094 = shalt.err (!%p4091_p4)
}
  0x2d   :  { %s4095_s3 = scalar_lea.vmem %s24_s29, 640  ;;  %p4100_p6 = scmp.lt.s32.totalorder %s24_s29, %s24_s29 }
  0x2e   :  { %p4096_p5 = scmp.ne.s32.totalorder %s24_s29, %s4095_s3  ;;  %p4101_p7 = scmp.lt.s32.totalorder %s4095_s3, %s4095_s3 }
  0x30   :  { %p4102_p8 = por %p4101_p7, %p4100_p6 }
  0x32   :  { %p4103_p9 = pnand %p4102_p8, %p4096_p5 }
  0x34   :  { %4106 = shalt.err (!%p4103_p9)
}
  0x35   :  { %26 = dma.hbm_to_vmem [thread:$0]  %s4395_s0, 640, %s24_s29, [#allocation4]  }
  0x36   :  { %s4107_s20 = scalar_lea.hbm %s4397_s2, 64 }
  0x37   :  { %p4108_p10 = scmp.ne.s32.totalorder %s4397_s2, %s4107_s20  ;;  %p4111_p11 = scmp.lt.u32.totalorder %s4107_s20, %s4397_s2 }
  0x39   :  { %p4113_p12 = pnand %p4111_p11, %p4108_p10 }
  0x3b   :  { %4116 = shalt.err (!%p4113_p12)
}
  0x3c   :  { %s4117_s1 = scalar_lea.vmem %s46_s8, 64  ;;  %p4122_p0 = scmp.lt.s32.totalorder %s46_s8, %s46_s8 }
  0x3d   :  { %p4118_p13 = scmp.ne.s32.totalorder %s46_s8, %s4117_s1  ;;  %p4123_p1 = scmp.lt.s32.totalorder %s4117_s1, %s4117_s1 }
  0x3f   :  { %p4124_p2 = por %p4123_p1, %p4122_p0 }
  0x41   :  { %p4125_p3 = pnand %p4124_p2, %p4118_p13 }
  0x43   :  { %4128 = shalt.err (!%p4125_p3)
}
  0x44   :  { %48 = dma.hbm_to_vmem [thread:$0]  %s4397_s2, 64, %s46_s8, [#allocation6]  }
  0x45   :  { %s4189_s26 = smov [#allocation10]   ;;  %s4190_s28 = smov [#allocation11]  }
  0x46   :  { %s67_s27 = sshll.u32 %s4189_s26, 4  ;;  %s77_s29 = sshll.u32 %s4190_s28, 4  ;;  %s68_s27 = int_to_ptr.vmem [resolvable:$true] %s67_s27  ;;  %s78_s29 = int_to_ptr.vmem [resolvable:$true] %s77_s29 }
  0x47   :  { %s4129_s10 = scalar_lea.hbm %s4399_s4, 32 }
  0x48   :  { %p4130_p4 = scmp.ne.s32.totalorder %s4399_s4, %s4129_s10  ;;  %p4133_p5 = scmp.lt.u32.totalorder %s4129_s10, %s4399_s4 }
  0x4a   :  { %p4135_p6 = pnand %p4133_p5, %p4130_p4 }
  0x4c   :  { %4138 = shalt.err (!%p4135_p6)
}
  0x4d   :  { %s4139_s2 = scalar_lea.vmem %s68_s27, 32  ;;  %p4144_p8 = scmp.lt.s32.totalorder %s68_s27, %s68_s27 }
  0x4e   :  { %p4140_p7 = scmp.ne.s32.totalorder %s68_s27, %s4139_s2  ;;  %p4145_p9 = scmp.lt.s32.totalorder %s4139_s2, %s4139_s2 }
  0x50   :  { %p4146_p10 = por %p4145_p9, %p4144_p8 }
  0x52   :  { %p4147_p11 = pnand %p4146_p10, %p4140_p7 }
  0x54   :  { %4150 = shalt.err (!%p4147_p11)
}
  0x55   :  { %70 = dma.hbm_to_vmem [thread:$0]  %s4399_s4, 32, %s68_s27, [#allocation9]  }
  0x56   :  { %s4151_s17 = scalar_lea.hbm %s4400_s5, 32 }
  0x57   :  { %p4152_p12 = scmp.ne.s32.totalorder %s4400_s5, %s4151_s17  ;;  %p4155_p13 = scmp.lt.u32.totalorder %s4151_s17, %s4400_s5 }
  0x59   :  { %p4157_p0 = pnand %p4155_p13, %p4152_p12 }
  0x5b   :  { %4160 = shalt.err (!%p4157_p0)
}
  0x5c   :  { %s4161_s22 = scalar_lea.vmem %s78_s29, 32  ;;  %p4166_p2 = scmp.lt.s32.totalorder %s78_s29, %s78_s29 }
  0x5d   :  { %p4162_p1 = scmp.ne.s32.totalorder %s78_s29, %s4161_s22  ;;  %p4167_p3 = scmp.lt.s32.totalorder %s4161_s22, %s4161_s22 }
  0x5f   :  { %p4168_p4 = por %p4167_p3, %p4166_p2 }
  0x61   :  { %p4169_p5 = pnand %p4168_p4, %p4162_p1 }
  0x63   :  { %4172 = shalt.err (!%p4169_p5)
}
  0x64   :  { %80 = dma.hbm_to_vmem [thread:$0]  %s4400_s5, 32, %s78_s29, [#allocation12]  }
  0x65   :  { %4173 = dma.done.wait [#allocation4], 640  }
  0x66   :  { %4174 = vsyncadd [#allocation4], 4294966656 }
  0x67   :  { %4175 = dma.done.wait [#allocation6], 41024  }
  0x68   :  { %4176 = vsyncadd [#allocation6], 4294926272 }
  0x69   :  { %4177 = dma.done.wait [#allocation9], 8224  }
  0x6a   :  { %4178 = vsyncadd [#allocation9], 4294959072 }
  0x6b   :  { %4179 = dma.done.wait [#allocation12], 32  }
  0x6c   :  { %4180 = vsyncadd [#allocation12], 4294967264  ;;  %v3455_v0 = vld [vmem:[#allocation5 + $0x4] ss:$16 sps:$4 sm:$0xff]   ;;  %v3459_v2 = vld [vmem:[#allocation5] ss:$16 sps:$4 sm:$0xff]  }
  0x6d   :  { %v3457_v1 = vld [vmem:[#allocation5 + $0x204] ss:$16 sps:$4 sm:$0xff]   ;;  %2083 = vmatprep.subr.bf16.mxu1 %v3455_v0  ;;  %v3460_v3 = vld [vmem:[#allocation5 + $0x200] ss:$16 sps:$4 sm:$0xff]   ;;  %v101_v46 = vld [vmem:[#allocation3] sm:$0xff]  ;;  %vm3001_vm0 = vcmask 7168  }
  0x6e   :  { %2124 = vmatprep.subr.bf16.mxu0 %v3457_v1  ;;  %v3461_v4 = vld [vmem:[#allocation5 + $0x24] ss:$16 sps:$4 sm:$0xff]   ;;  %2084 = vmatpush1.bf16.msra.mxu1 %v3459_v2  ;;  %v3465_v6 = vld [vmem:[#allocation5 + $0x20] ss:$16 sps:$4 sm:$0xff]   ;;  %v4303_v47 = vcombine.high %v101_v46, %v101_v46 }
  0x6f   :  { %2125 = vmatpush1.bf16.msra.mxu0 %v3460_v3  ;;  %v3463_v5 = vld [vmem:[#allocation5 + $0x224] ss:$16 sps:$4 sm:$0xff]   ;;  %2085 = vmatprep.subr.bf16.mxu1 %v3461_v4  ;;  %v3466_v7 = vld [vmem:[#allocation5 + $0x220] ss:$16 sps:$4 sm:$0xff]  }
  0x70   :  { %2126 = vmatprep.subr.bf16.mxu0 %v3463_v5  ;;  %v3467_v8 = vld [vmem:[#allocation5 + $0x44] ss:$16 sps:$4 sm:$0xff]   ;;  %v3471_v10 = vld [vmem:[#allocation5 + $0x40] ss:$16 sps:$4 sm:$0xff]   ;;  %2115 = vmatprep.mubr.bf16.mxu1 %v4303_v47  ;;  %v3560_v5 = vld [vmem:[#allocation5 + $0xc] ss:$16 sps:$4 sm:$0xff]  }
  0x71   :  { %v3469_v9 = vld [vmem:[#allocation5 + $0x244] ss:$16 sps:$4 sm:$0xff]   ;;  %v3472_v11 = vld [vmem:[#allocation5 + $0x240] ss:$16 sps:$4 sm:$0xff]  }
  0x72   :  { %2086 = vmatpush1.bf16.msra.mxu1 %v3465_v6  ;;  %v3473_v12 = vld [vmem:[#allocation5 + $0x64] ss:$16 sps:$4 sm:$0xff]   ;;  %v3477_v14 = vld [vmem:[#allocation5 + $0x60] ss:$16 sps:$4 sm:$0xff]   ;;  %v4309_v6 = vcombine.low %v101_v46, %v101_v46 }
  0x73   :  { %2127 = vmatpush1.bf16.msra.mxu0 %v3466_v7  ;;  %2087 = vmatprep.subr.bf16.mxu1 %v3467_v8  ;;  %v3475_v13 = vld [vmem:[#allocation5 + $0x264] ss:$16 sps:$4 sm:$0xff]   ;;  %v3478_v15 = vld [vmem:[#allocation5 + $0x260] ss:$16 sps:$4 sm:$0xff]  }
  0x74   :  { %2128 = vmatprep.subr.bf16.mxu0 %v3469_v9  ;;  %v3479_v16 = vld [vmem:[#allocation5 + $0x84] ss:$16 sps:$4 sm:$0xff]   ;;  %v3483_v18 = vld [vmem:[#allocation5 + $0x80] ss:$16 sps:$4 sm:$0xff]   ;;  %v3558_v9 = vld [vmem:[#allocation5 + $0x8] ss:$16 sps:$4 sm:$0xff]  }
  0x75   :  { %v3481_v17 = vld [vmem:[#allocation5 + $0x284] ss:$16 sps:$4 sm:$0xff]   ;;  %v3484_v19 = vld [vmem:[#allocation5 + $0x280] ss:$16 sps:$4 sm:$0xff]  }
  0x76   :  { %2088 = vmatpush1.bf16.msra.mxu1 %v3471_v10  ;;  %v3485_v20 = vld [vmem:[#allocation5 + $0xa4] ss:$16 sps:$4 sm:$0xff]   ;;  %v3489_v22 = vld [vmem:[#allocation5 + $0xa0] ss:$16 sps:$4 sm:$0xff]  }
  0x77   :  { %2129 = vmatpush1.bf16.msra.mxu0 %v3472_v11  ;;  %2089 = vmatprep.subr.bf16.mxu1 %v3473_v12  ;;  %v3487_v21 = vld [vmem:[#allocation5 + $0x2a4] ss:$16 sps:$4 sm:$0xff]   ;;  %v3490_v23 = vld [vmem:[#allocation5 + $0x2a0] ss:$16 sps:$4 sm:$0xff]   ;;  %v3566_v11 = vld [vmem:[#allocation5 + $0x2c] ss:$16 sps:$4 sm:$0xff]  }
  0x78   :  { %2130 = vmatprep.subr.bf16.mxu0 %v3475_v13  ;;  %v3491_v24 = vld [vmem:[#allocation5 + $0xc4] ss:$16 sps:$4 sm:$0xff]   ;;  %v3495_v26 = vld [vmem:[#allocation5 + $0xc0] ss:$16 sps:$4 sm:$0xff]   ;;  %v3564_v13 = vld [vmem:[#allocation5 + $0x28] ss:$16 sps:$4 sm:$0xff]  }
  0x79   :  { %v3493_v25 = vld [vmem:[#allocation5 + $0x2c4] ss:$16 sps:$4 sm:$0xff]   ;;  %v3496_v27 = vld [vmem:[#allocation5 + $0x2c0] ss:$16 sps:$4 sm:$0xff]  }
  0x7a   :  { %2090 = vmatpush1.bf16.msra.mxu1 %v3477_v14  ;;  %v3497_v28 = vld [vmem:[#allocation5 + $0xe4] ss:$16 sps:$4 sm:$0xff]   ;;  %v3501_v30 = vld [vmem:[#allocation5 + $0xe0] ss:$16 sps:$4 sm:$0xff]  }
  0x7b   :  { %2131 = vmatpush1.bf16.msra.mxu0 %v3478_v15  ;;  %2091 = vmatprep.subr.bf16.mxu1 %v3479_v16  ;;  %v3499_v29 = vld [vmem:[#allocation5 + $0x2e4] ss:$16 sps:$4 sm:$0xff]   ;;  %v3502_v31 = vld [vmem:[#allocation5 + $0x2e0] ss:$16 sps:$4 sm:$0xff]   ;;  %v3572_v15 = vld [vmem:[#allocation5 + $0x4c] ss:$16 sps:$4 sm:$0xff]  }
  0x7c   :  { %2132 = vmatprep.subr.bf16.mxu0 %v3481_v17  ;;  %v3503_v32 = vld [vmem:[#allocation5 + $0x104] ss:$16 sps:$4 sm:$0xff]   ;;  %v3507_v34 = vld [vmem:[#allocation5 + $0x100] ss:$16 sps:$4 sm:$0xff]   ;;  %v3570_v17 = vld [vmem:[#allocation5 + $0x48] ss:$16 sps:$4 sm:$0xff]  }
  0x7d   :  { %v3505_v33 = vld [vmem:[#allocation5 + $0x304] ss:$16 sps:$4 sm:$0xff]   ;;  %v3508_v35 = vld [vmem:[#allocation5 + $0x300] ss:$16 sps:$4 sm:$0xff]  }
  0x7e   :  { %2092 = vmatpush1.bf16.msra.mxu1 %v3483_v18  ;;  %v3509_v36 = vld [vmem:[#allocation5 + $0x124] ss:$16 sps:$4 sm:$0xff]   ;;  %v3513_v38 = vld [vmem:[#allocation5 + $0x120] ss:$16 sps:$4 sm:$0xff]  }
  0x7f   :  { %2133 = vmatpush1.bf16.msra.mxu0 %v3484_v19  ;;  %2093 = vmatprep.subr.bf16.mxu1 %v3485_v20  ;;  %v3511_v37 = vld [vmem:[#allocation5 + $0x324] ss:$16 sps:$4 sm:$0xff]   ;;  %v3514_v39 = vld [vmem:[#allocation5 + $0x320] ss:$16 sps:$4 sm:$0xff]   ;;  %v3578_v19 = vld [vmem:[#allocation5 + $0x6c] ss:$16 sps:$4 sm:$0xff]  }
  0x80   :  { %2134 = vmatprep.subr.bf16.mxu0 %v3487_v21  ;;  %v3515_v40 = vld [vmem:[#allocation5 + $0x144] ss:$16 sps:$4 sm:$0xff]   ;;  %v3519_v42 = vld [vmem:[#allocation5 + $0x140] ss:$16 sps:$4 sm:$0xff]   ;;  %v3576_v21 = vld [vmem:[#allocation5 + $0x68] ss:$16 sps:$4 sm:$0xff]  }
  0x81   :  { %v3517_v41 = vld [vmem:[#allocation5 + $0x344] ss:$16 sps:$4 sm:$0xff]   ;;  %v3520_v43 = vld [vmem:[#allocation5 + $0x340] ss:$16 sps:$4 sm:$0xff]  }
  0x82   :  { %2094 = vmatpush1.bf16.msra.mxu1 %v3489_v22  ;;  %v3521_v44 = vld [vmem:[#allocation5 + $0x164] ss:$16 sps:$4 sm:$0xff]   ;;  %v3525_v49 = vld [vmem:[#allocation5 + $0x160] ss:$16 sps:$4 sm:$0xff]  }
  0x83   :  { %2135 = vmatpush1.bf16.msra.mxu0 %v3490_v23  ;;  %2095 = vmatprep.subr.bf16.mxu1 %v3491_v24  ;;  %v3523_v45 = vld [vmem:[#allocation5 + $0x364] ss:$16 sps:$4 sm:$0xff]   ;;  %v3526_v50 = vld [vmem:[#allocation5 + $0x360] ss:$16 sps:$4 sm:$0xff]   ;;  %v3584_v23 = vld [vmem:[#allocation5 + $0x8c] ss:$16 sps:$4 sm:$0xff]  }
  0x84   :  { %2136 = vmatprep.subr.bf16.mxu0 %v3493_v25  ;;  %v102_v48 = vld [vmem:[#allocation3 + $0x8] sm:$0xff]  ;;  %v3582_v25 = vld [vmem:[#allocation5 + $0x88] ss:$16 sps:$4 sm:$0xff]  }
  0x85   :  { %v4305_v51 = vcombine.high %v102_v48, %v102_v48  ;;  %v3527_v52 = vld [vmem:[#allocation5 + $0x184] ss:$16 sps:$4 sm:$0xff]   ;;  %v3531_v54 = vld [vmem:[#allocation5 + $0x180] ss:$16 sps:$4 sm:$0xff]   ;;  %v4311_v7 = vcombine.low %v102_v48, %v102_v48 }
  0x86   :  { %2096 = vmatpush1.bf16.msra.mxu1 %v3495_v26  ;;  %v3529_v53 = vld [vmem:[#allocation5 + $0x384] ss:$16 sps:$4 sm:$0xff]   ;;  %v3532_v55 = vld [vmem:[#allocation5 + $0x380] ss:$16 sps:$4 sm:$0xff]  }
  0x87   :  { %2137 = vmatpush1.bf16.msra.mxu0 %v3496_v27  ;;  %2097 = vmatprep.subr.bf16.mxu1 %v3497_v28  ;;  %v3533_v56 = vld [vmem:[#allocation5 + $0x1a4] ss:$16 sps:$4 sm:$0xff]   ;;  %v3537_v58 = vld [vmem:[#allocation5 + $0x1a0] ss:$16 sps:$4 sm:$0xff]   ;;  %v3590_v27 = vld [vmem:[#allocation5 + $0xac] ss:$16 sps:$4 sm:$0xff]  }
  0x88   :  { %2138 = vmatprep.subr.bf16.mxu0 %v3499_v29  ;;  %2156 = vmatprep.mubr.bf16.mxu0 %v4305_v51  ;;  %v3535_v57 = vld [vmem:[#allocation5 + $0x3a4] ss:$16 sps:$4 sm:$0xff]   ;;  %v3538_v59 = vld [vmem:[#allocation5 + $0x3a0] ss:$16 sps:$4 sm:$0xff]   ;;  %v3588_v29 = vld [vmem:[#allocation5 + $0xa8] ss:$16 sps:$4 sm:$0xff]  }
  0x89   :  { %v3539_v60 = vld [vmem:[#allocation5 + $0x1c4] ss:$16 sps:$4 sm:$0xff]   ;;  %v3543_v62 = vld [vmem:[#allocation5 + $0x1c0] ss:$16 sps:$4 sm:$0xff]  }
  0x8a   :  { %2098 = vmatpush1.bf16.msra.mxu1 %v3501_v30  ;;  %v3541_v61 = vld [vmem:[#allocation5 + $0x3c4] ss:$16 sps:$4 sm:$0xff]   ;;  %v3544_v63 = vld [vmem:[#allocation5 + $0x3c0] ss:$16 sps:$4 sm:$0xff]  }
  0x8b   :  { %2139 = vmatpush1.bf16.msra.mxu0 %v3502_v31  ;;  %2099 = vmatprep.subr.bf16.mxu1 %v3503_v32  ;;  %v3545_v0 = vld [vmem:[#allocation5 + $0x1e4] ss:$16 sps:$4 sm:$0xff]   ;;  %v3549_v2 = vld [vmem:[#allocation5 + $0x1e0] ss:$16 sps:$4 sm:$0xff]   ;;  %v3596_v31 = vld [vmem:[#allocation5 + $0xcc] ss:$16 sps:$4 sm:$0xff]  }
  0x8c   :  { %2140 = vmatprep.subr.bf16.mxu0 %v3505_v33  ;;  %v3547_v1 = vld [vmem:[#allocation5 + $0x3e4] ss:$16 sps:$4 sm:$0xff]   ;;  %v3550_v3 = vld [vmem:[#allocation5 + $0x3e0] ss:$16 sps:$4 sm:$0xff]   ;;  %v4316_v32 = vld [vmem:[#allocation3 + $0x10] sm:$0xff] }
  0x8d   :  { %v3557_v4 = vld [vmem:[#allocation5 + $0x404] ss:$16 sps:$4 sm:$0xff]   ;;  %v3555_v8 = vld [vmem:[#allocation5 + $0x400] ss:$16 sps:$4 sm:$0xff]  }
  0x8e   :  { %2100 = vmatpush1.bf16.msra.mxu1 %v3507_v34  ;;  %v3563_v10 = vld [vmem:[#allocation5 + $0x424] ss:$16 sps:$4 sm:$0xff]   ;;  %v3561_v12 = vld [vmem:[#allocation5 + $0x420] ss:$16 sps:$4 sm:$0xff]   ;;  %v4320_v34 = vcombine.high %v4316_v32, %v4316_v32 }
  0x8f   :  { %2141 = vmatpush1.bf16.msra.mxu0 %v3508_v35  ;;  %2101 = vmatprep.subr.bf16.mxu1 %v3509_v36  ;;  %v3569_v14 = vld [vmem:[#allocation5 + $0x444] ss:$16 sps:$4 sm:$0xff]   ;;  %v3567_v16 = vld [vmem:[#allocation5 + $0x440] ss:$16 sps:$4 sm:$0xff]   ;;  %v3594_v35 = vld [vmem:[#allocation5 + $0xc8] ss:$16 sps:$4 sm:$0xff]  }
  0x90   :  { %2142 = vmatprep.subr.bf16.mxu0 %v3511_v37  ;;  %v3575_v18 = vld [vmem:[#allocation5 + $0x464] ss:$16 sps:$4 sm:$0xff]   ;;  %v3573_v20 = vld [vmem:[#allocation5 + $0x460] ss:$16 sps:$4 sm:$0xff]   ;;  %v3602_v37 = vld [vmem:[#allocation5 + $0xec] ss:$16 sps:$4 sm:$0xff]  }
  0x91   :  { %v3581_v22 = vld [vmem:[#allocation5 + $0x484] ss:$16 sps:$4 sm:$0xff]   ;;  %v3579_v24 = vld [vmem:[#allocation5 + $0x480] ss:$16 sps:$4 sm:$0xff]  }
  0x92   :  { %2102 = vmatpush1.bf16.msra.mxu1 %v3513_v38  ;;  %v3587_v26 = vld [vmem:[#allocation5 + $0x4a4] ss:$16 sps:$4 sm:$0xff]   ;;  %v3585_v28 = vld [vmem:[#allocation5 + $0x4a0] ss:$16 sps:$4 sm:$0xff]  }
  0x93   :  { %2143 = vmatpush1.bf16.msra.mxu0 %v3514_v39  ;;  %2103 = vmatprep.subr.bf16.mxu1 %v3515_v40  ;;  %v3593_v30 = vld [vmem:[#allocation5 + $0x4c4] ss:$16 sps:$4 sm:$0xff]   ;;  %v3591_v33 = vld [vmem:[#allocation5 + $0x4c0] ss:$16 sps:$4 sm:$0xff]   ;;  %v3600_v39 = vld [vmem:[#allocation5 + $0xe8] ss:$16 sps:$4 sm:$0xff]  }
  0x94   :  { %2144 = vmatprep.subr.bf16.mxu0 %v3517_v41  ;;  %v3599_v36 = vld [vmem:[#allocation5 + $0x4e4] ss:$16 sps:$4 sm:$0xff]   ;;  %v3597_v38 = vld [vmem:[#allocation5 + $0x4e0] ss:$16 sps:$4 sm:$0xff]   ;;  %v3608_v41 = vld [vmem:[#allocation5 + $0x10c] ss:$16 sps:$4 sm:$0xff]  }
  0x95   :  { %v3605_v40 = vld [vmem:[#allocation5 + $0x504] ss:$16 sps:$4 sm:$0xff]   ;;  %v3609_v46 = vld [vmem:[#allocation5 + $0x520] ss:$16 sps:$4 sm:$0xff]  }
  0x96   :  { %2104 = vmatpush1.bf16.msra.mxu1 %v3519_v42  ;;  %v3603_v42 = vld [vmem:[#allocation5 + $0x500] ss:$16 sps:$4 sm:$0xff]   ;;  %v3617_v48 = vld [vmem:[#allocation5 + $0x544] ss:$16 sps:$4 sm:$0xff]  }
  0x97   :  { %2145 = vmatpush1.bf16.msra.mxu0 %v3520_v43  ;;  %2105 = vmatprep.subr.bf16.mxu1 %v3521_v44  ;;  %v3606_v43 = vld [vmem:[#allocation5 + $0x108] ss:$16 sps:$4 sm:$0xff]   ;;  %v3611_v44 = vld [vmem:[#allocation5 + $0x524] ss:$16 sps:$4 sm:$0xff]  }
  0x98   :  { %2146 = vmatprep.subr.bf16.mxu0 %v3523_v45  ;;  %v3614_v45 = vld [vmem:[#allocation5 + $0x12c] ss:$16 sps:$4 sm:$0xff]  }
  0x9a   :  { %2106 = vmatpush1.bf16.msra.mxu1 %v3525_v49  ;;  %v3620_v49 = vld [vmem:[#allocation5 + $0x14c] ss:$16 sps:$4 sm:$0xff]  }
  0x9b   :  { %2147 = vmatpush1.bf16.msra.mxu0 %v3526_v50  ;;  %2107 = vmatprep.subr.bf16.mxu1 %v3527_v52  ;;  %v3615_v50 = vld [vmem:[#allocation5 + $0x540] ss:$16 sps:$4 sm:$0xff]   ;;  %v3618_v52 = vld [vmem:[#allocation5 + $0x148] ss:$16 sps:$4 sm:$0xff]  }
  0x9c   :  { %2148 = vmatprep.subr.bf16.mxu0 %v3529_v53  ;;  %v3623_v53 = vld [vmem:[#allocation5 + $0x564] ss:$16 sps:$4 sm:$0xff]  }
  0x9e   :  { %2108 = vmatpush1.bf16.msra.mxu1 %v3531_v54  ;;  %v3626_v54 = vld [vmem:[#allocation5 + $0x16c] ss:$16 sps:$4 sm:$0xff]  }
  0x9f   :  { %2149 = vmatpush1.bf16.msra.mxu0 %v3532_v55  ;;  %2109 = vmatprep.subr.bf16.mxu1 %v3533_v56  ;;  %v3621_v55 = vld [vmem:[#allocation5 + $0x560] ss:$16 sps:$4 sm:$0xff]   ;;  %v3624_v56 = vld [vmem:[#allocation5 + $0x168] ss:$16 sps:$4 sm:$0xff]  }
  0xa0   :  { %2150 = vmatprep.subr.bf16.mxu0 %v3535_v57  ;;  %v3629_v57 = vld [vmem:[#allocation5 + $0x584] ss:$16 sps:$4 sm:$0xff]  }
  0xa2   :  { %2110 = vmatpush1.bf16.msra.mxu1 %v3537_v58  ;;  %v3632_v58 = vld [vmem:[#allocation5 + $0x18c] ss:$16 sps:$4 sm:$0xff]  }
  0xa3   :  { %2151 = vmatpush1.bf16.msra.mxu0 %v3538_v59  ;;  %2111 = vmatprep.subr.bf16.mxu1 %v3539_v60  ;;  %v3627_v59 = vld [vmem:[#allocation5 + $0x580] ss:$16 sps:$4 sm:$0xff]   ;;  %v3630_v60 = vld [vmem:[#allocation5 + $0x188] ss:$16 sps:$4 sm:$0xff]  }
  0xa4   :  { %2152 = vmatprep.subr.bf16.mxu0 %v3541_v61  ;;  %v3635_v61 = vld [vmem:[#allocation5 + $0x5a4] ss:$16 sps:$4 sm:$0xff]  }
  0xa6   :  { %2112 = vmatpush1.bf16.msra.mxu1 %v3543_v62  ;;  %v3638_v62 = vld [vmem:[#allocation5 + $0x1ac] ss:$16 sps:$4 sm:$0xff]  }
  0xa7   :  { %2153 = vmatpush1.bf16.msra.mxu0 %v3544_v63  ;;  %2113 = vmatprep.subr.bf16.mxu1 %v3545_v0  ;;  %v3633_v63 = vld [vmem:[#allocation5 + $0x5a0] ss:$16 sps:$4 sm:$0xff]   ;;  %v3636_v0 = vld [vmem:[#allocation5 + $0x1a8] ss:$16 sps:$4 sm:$0xff]  }
  0xa8   :  { %2154 = vmatprep.subr.bf16.mxu0 %v3547_v1  ;;  %v3641_v1 = vld [vmem:[#allocation5 + $0x5c4] ss:$16 sps:$4 sm:$0xff]  }
  0xaa   :  { %2114 = vmatpush1.bf16.msra.mxu1 %v3549_v2  ;;  %v3644_v2 = vld [vmem:[#allocation5 + $0x1cc] ss:$16 sps:$4 sm:$0xff]  }
  0xab   :  { %2155 = vmatpush1.bf16.msra.mxu0 %v3550_v3  ;;  %2288 = vmatprep.subr.bf16.mxu1 %v3560_v5  ;;  %v3639_v3 = vld [vmem:[#allocation5 + $0x5c0] ss:$16 sps:$4 sm:$0xff]   ;;  %v3647_v5 = vld [vmem:[#allocation5 + $0x5e4] ss:$16 sps:$4 sm:$0xff]  }
  0xac   :  { %2165 = vmatprep.subr.bf16.mxu0 %v3557_v4  ;;  %v3642_v4 = vld [vmem:[#allocation5 + $0x1c8] ss:$16 sps:$4 sm:$0xff]  }
  0xad   :  { %2116 = vmatmul.mubr.bf16.vlgmr.msra.gmra.mrb[0].mxu1 %v4309_v6 }
  0xae   :  { %2157 = vmatmul.mubr.bf16.vlgmr.msra.gmra.mrb[0].mxu0 %v4311_v7  ;;  %2289 = vmatpush1.bf16.msra.mxu1 %v3558_v9  ;;  %v3645_v9 = vld [vmem:[#allocation5 + $0x5e0] ss:$16 sps:$4 sm:$0xff]  }
  0xaf   :  { %2166 = vmatpush1.bf16.msra.mxu0 %v3555_v8  ;;  %2290 = vmatprep.subr.bf16.mxu1 %v3566_v11  ;;  %v3650_v8 = vld [vmem:[#allocation5 + $0x1ec] ss:$16 sps:$4 sm:$0xff]   ;;  %v3655_v11 = vld [vmem:[#allocation5 + $0x604] ss:$16 sps:$4 sm:$0xff]  }
  0xb0   :  { %2167 = vmatprep.subr.bf16.mxu0 %v3563_v10  ;;  %2320 = vmatprep.mubr.bf16.mxu1 %v4303_v47  ;;  %v3612_v47 = vld [vmem:[#allocation5 + $0x128] ss:$16 sps:$4 sm:$0xff]  }
  0xb1   :  { %2197 = vmatprep.mubr.bf16.mxu0 %v4320_v34  ;;  %v3648_v10 = vld [vmem:[#allocation5 + $0x1e8] ss:$16 sps:$4 sm:$0xff]  }
  0xb2   :  { %2291 = vmatpush1.bf16.msra.mxu1 %v3564_v13  ;;  %v4325_v13 = vcombine.low %v4316_v32, %v4316_v32  ;;  %v3680_v32 = vld [vmem:[#allocation5 + $0x288] ss:$16 sps:$4 sm:$0xff]  }
  0xb3   :  { %2168 = vmatpush1.bf16.msra.mxu0 %v3561_v12  ;;  %2292 = vmatprep.subr.bf16.mxu1 %v3572_v15  ;;  %v3658_v12 = vld [vmem:[#allocation5 + $0x20c] ss:$16 sps:$4 sm:$0xff]   ;;  %v3656_v15 = vld [vmem:[#allocation5 + $0x208] ss:$16 sps:$4 sm:$0xff]  }
  0xb4   :  { %2169 = vmatprep.subr.bf16.mxu0 %v3569_v14  ;;  %v3653_v14 = vld [vmem:[#allocation5 + $0x600] ss:$16 sps:$4 sm:$0xff]  }
  0xb6   :  { %2293 = vmatpush1.bf16.msra.mxu1 %v3570_v17  ;;  %v3664_v17 = vld [vmem:[#allocation5 + $0x22c] ss:$16 sps:$4 sm:$0xff]  }
  0xb7   :  { %2170 = vmatpush1.bf16.msra.mxu0 %v3567_v16  ;;  %2294 = vmatprep.subr.bf16.mxu1 %v3578_v19  ;;  %v3661_v16 = vld [vmem:[#allocation5 + $0x624] ss:$16 sps:$4 sm:$0xff]  }
  0xb8   :  { %2171 = vmatprep.subr.bf16.mxu0 %v3575_v18  ;;  %v4327_v18 = vld [vmem:[#allocation3 + $0x18] sm:$0xff] }
  0xb9   :  { %v4331_v19 = vcombine.high %v4327_v18, %v4327_v18 }
  0xba   :  { %2295 = vmatpush1.bf16.msra.mxu1 %v3576_v21  ;;  %v3662_v21 = vld [vmem:[#allocation5 + $0x228] ss:$16 sps:$4 sm:$0xff]  }
  0xbb   :  { %2172 = vmatpush1.bf16.msra.mxu0 %v3573_v20  ;;  %2296 = vmatprep.subr.bf16.mxu1 %v3584_v23  ;;  %v3659_v20 = vld [vmem:[#allocation5 + $0x620] ss:$16 sps:$4 sm:$0xff]   ;;  %v3670_v23 = vld [vmem:[#allocation5 + $0x24c] ss:$16 sps:$4 sm:$0xff]  }
  0xbc   :  { %2173 = vmatprep.subr.bf16.mxu0 %v3581_v22  ;;  %v3667_v22 = vld [vmem:[#allocation5 + $0x644] ss:$16 sps:$4 sm:$0xff]  }
  0xbe   :  { %2297 = vmatpush1.bf16.msra.mxu1 %v3582_v25  ;;  %v3668_v25 = vld [vmem:[#allocation5 + $0x248] ss:$16 sps:$4 sm:$0xff]  }
  0xbf   :  { %2174 = vmatpush1.bf16.msra.mxu0 %v3579_v24  ;;  %2298 = vmatprep.subr.bf16.mxu1 %v3590_v27  ;;  %v3665_v24 = vld [vmem:[#allocation5 + $0x640] ss:$16 sps:$4 sm:$0xff]  }
  0xc0   :  { %2175 = vmatprep.subr.bf16.mxu0 %v3587_v26  ;;  %v3673_v26 = vld [vmem:[#allocation5 + $0x664] ss:$16 sps:$4 sm:$0xff]   ;;  %v3671_v27 = vld [vmem:[#allocation5 + $0x660] ss:$16 sps:$4 sm:$0xff]  }
  0xc2   :  { %2299 = vmatpush1.bf16.msra.mxu1 %v3588_v29  ;;  %v3679_v29 = vld [vmem:[#allocation5 + $0x684] ss:$16 sps:$4 sm:$0xff]  }
  0xc3   :  { %2176 = vmatpush1.bf16.msra.mxu0 %v3585_v28  ;;  %2300 = vmatprep.subr.bf16.mxu1 %v3596_v31  ;;  %v3674_v28 = vld [vmem:[#allocation5 + $0x268] ss:$16 sps:$4 sm:$0xff]   ;;  %v3677_v31 = vld [vmem:[#allocation5 + $0x680] ss:$16 sps:$4 sm:$0xff]  }
  0xc4   :  { %2177 = vmatprep.subr.bf16.mxu0 %v3593_v30  ;;  %v3682_v30 = vld [vmem:[#allocation5 + $0x28c] ss:$16 sps:$4 sm:$0xff]  }
  0xc6   :  { %2301 = vmatpush1.bf16.msra.mxu1 %v3594_v35  ;;  %v3683_v35 = vld [vmem:[#allocation5 + $0x6a0] ss:$16 sps:$4 sm:$0xff]  }
  0xc7   :  { %2178 = vmatpush1.bf16.msra.mxu0 %v3591_v33  ;;  %2302 = vmatprep.subr.bf16.mxu1 %v3602_v37  ;;  %v3688_v33 = vld [vmem:[#allocation5 + $0x2ac] ss:$16 sps:$4 sm:$0xff]   ;;  %v3691_v37 = vld [vmem:[#allocation5 + $0x6c4] ss:$16 sps:$4 sm:$0xff]  }
  0xc8   :  { %2179 = vmatprep.subr.bf16.mxu0 %v3599_v36  ;;  %v3686_v36 = vld [vmem:[#allocation5 + $0x2a8] ss:$16 sps:$4 sm:$0xff]  }
  0xca   :  { %2303 = vmatpush1.bf16.msra.mxu1 %v3600_v39  ;;  %v3689_v39 = vld [vmem:[#allocation5 + $0x6c0] ss:$16 sps:$4 sm:$0xff]  }
  0xcb   :  { %2180 = vmatpush1.bf16.msra.mxu0 %v3597_v38  ;;  %2304 = vmatprep.subr.bf16.mxu1 %v3608_v41  ;;  %v3694_v38 = vld [vmem:[#allocation5 + $0x2cc] ss:$16 sps:$4 sm:$0xff]   ;;  %v3697_v41 = vld [vmem:[#allocation5 + $0x6e4] ss:$16 sps:$4 sm:$0xff]  }
  0xcc   :  { %2181 = vmatprep.subr.bf16.mxu0 %v3605_v40  ;;  %v3692_v40 = vld [vmem:[#allocation5 + $0x2c8] ss:$16 sps:$4 sm:$0xff]  }
  0xce   :  { %2305 = vmatpush1.bf16.msra.mxu1 %v3606_v43  ;;  %v3695_v43 = vld [vmem:[#allocation5 + $0x6e0] ss:$16 sps:$4 sm:$0xff]  }
  0xcf   :  { %2182 = vmatpush1.bf16.msra.mxu0 %v3603_v42  ;;  %2306 = vmatprep.subr.bf16.mxu1 %v3614_v45  ;;  %v3700_v42 = vld [vmem:[#allocation5 + $0x2ec] ss:$16 sps:$4 sm:$0xff]   ;;  %v3703_v45 = vld [vmem:[#allocation5 + $0x704] ss:$16 sps:$4 sm:$0xff]  }
  0xd0   :  { %2183 = vmatprep.subr.bf16.mxu0 %v3611_v44  ;;  %v3698_v44 = vld [vmem:[#allocation5 + $0x2e8] ss:$16 sps:$4 sm:$0xff]  }
  0xd2   :  { %2307 = vmatpush1.bf16.msra.mxu1 %v3612_v47  ;;  %v3701_v47 = vld [vmem:[#allocation5 + $0x700] ss:$16 sps:$4 sm:$0xff]  }
  0xd3   :  { %2184 = vmatpush1.bf16.msra.mxu0 %v3609_v46  ;;  %2308 = vmatprep.subr.bf16.mxu1 %v3620_v49  ;;  %v3706_v46 = vld [vmem:[#allocation5 + $0x30c] ss:$16 sps:$4 sm:$0xff]   ;;  %v3709_v49 = vld [vmem:[#allocation5 + $0x724] ss:$16 sps:$4 sm:$0xff]  }
  0xd4   :  { %2185 = vmatprep.subr.bf16.mxu0 %v3617_v48  ;;  %v3704_v48 = vld [vmem:[#allocation5 + $0x308] ss:$16 sps:$4 sm:$0xff]  }
  0xd6   :  { %2309 = vmatpush1.bf16.msra.mxu1 %v3618_v52  ;;  %v3707_v52 = vld [vmem:[#allocation5 + $0x720] ss:$16 sps:$4 sm:$0xff]  }
  0xd7   :  { %2186 = vmatpush1.bf16.msra.mxu0 %v3615_v50  ;;  %2310 = vmatprep.subr.bf16.mxu1 %v3626_v54  ;;  %v3712_v50 = vld [vmem:[#allocation5 + $0x32c] ss:$16 sps:$4 sm:$0xff]   ;;  %v3715_v54 = vld [vmem:[#allocation5 + $0x744] ss:$16 sps:$4 sm:$0xff]  }
  0xd8   :  { %2187 = vmatprep.subr.bf16.mxu0 %v3623_v53  ;;  %v3710_v53 = vld [vmem:[#allocation5 + $0x328] ss:$16 sps:$4 sm:$0xff]  }
  0xda   :  { %2311 = vmatpush1.bf16.msra.mxu1 %v3624_v56  ;;  %v3713_v56 = vld [vmem:[#allocation5 + $0x740] ss:$16 sps:$4 sm:$0xff]  }
  0xdb   :  { %2188 = vmatpush1.bf16.msra.mxu0 %v3621_v55  ;;  %2312 = vmatprep.subr.bf16.mxu1 %v3632_v58  ;;  %v3718_v55 = vld [vmem:[#allocation5 + $0x34c] ss:$16 sps:$4 sm:$0xff]   ;;  %v3721_v58 = vld [vmem:[#allocation5 + $0x764] ss:$16 sps:$4 sm:$0xff]  }
  0xdc   :  { %2189 = vmatprep.subr.bf16.mxu0 %v3629_v57  ;;  %v3716_v57 = vld [vmem:[#allocation5 + $0x348] ss:$16 sps:$4 sm:$0xff]  }
  0xde   :  { %2313 = vmatpush1.bf16.msra.mxu1 %v3630_v60  ;;  %v3719_v60 = vld [vmem:[#allocation5 + $0x760] ss:$16 sps:$4 sm:$0xff]  }
  0xdf   :  { %2190 = vmatpush1.bf16.msra.mxu0 %v3627_v59  ;;  %2314 = vmatprep.subr.bf16.mxu1 %v3638_v62  ;;  %v3724_v59 = vld [vmem:[#allocation5 + $0x36c] ss:$16 sps:$4 sm:$0xff]   ;;  %v3727_v62 = vld [vmem:[#allocation5 + $0x784] ss:$16 sps:$4 sm:$0xff]  }
  0xe0   :  { %2191 = vmatprep.subr.bf16.mxu0 %v3635_v61  ;;  %v3722_v61 = vld [vmem:[#allocation5 + $0x368] ss:$16 sps:$4 sm:$0xff]  }
  0xe2   :  { %2315 = vmatpush1.bf16.msra.mxu1 %v3636_v0  ;;  %v3725_v0 = vld [vmem:[#allocation5 + $0x780] ss:$16 sps:$4 sm:$0xff]  }
  0xe3   :  { %2192 = vmatpush1.bf16.msra.mxu0 %v3633_v63  ;;  %2316 = vmatprep.subr.bf16.mxu1 %v3644_v2  ;;  %v3730_v63 = vld [vmem:[#allocation5 + $0x38c] ss:$16 sps:$4 sm:$0xff]   ;;  %v3733_v2 = vld [vmem:[#allocation5 + $0x7a4] ss:$16 sps:$4 sm:$0xff]  }
  0xe4   :  { %2193 = vmatprep.subr.bf16.mxu0 %v3641_v1  ;;  %v3728_v1 = vld [vmem:[#allocation5 + $0x388] ss:$16 sps:$4 sm:$0xff]  }
  0xe6   :  { %2317 = vmatpush1.bf16.msra.mxu1 %v3642_v4  ;;  %v3731_v4 = vld [vmem:[#allocation5 + $0x7a0] ss:$16 sps:$4 sm:$0xff]  }
  0xe7   :  { %2194 = vmatpush1.bf16.msra.mxu0 %v3639_v3  ;;  %2318 = vmatprep.subr.bf16.mxu1 %v3650_v8  ;;  %v3736_v3 = vld [vmem:[#allocation5 + $0x3ac] ss:$16 sps:$4 sm:$0xff]   ;;  %v3739_v8 = vld [vmem:[#allocation5 + $0x7c4] ss:$16 sps:$4 sm:$0xff]  }
  0xe8   :  { %2195 = vmatprep.subr.bf16.mxu0 %v3647_v5  ;;  %v3734_v5 = vld [vmem:[#allocation5 + $0x3a8] ss:$16 sps:$4 sm:$0xff]  }
  0xea   :  { %2319 = vmatpush1.bf16.msra.mxu1 %v3648_v10  ;;  %v3737_v10 = vld [vmem:[#allocation5 + $0x7c0] ss:$16 sps:$4 sm:$0xff]  }
  0xeb   :  { %2196 = vmatpush1.bf16.msra.mxu0 %v3645_v9  ;;  %2329 = vmatprep.subr.bf16.mxu1 %v3658_v12  ;;  %v3742_v9 = vld [vmem:[#allocation5 + $0x3cc] ss:$16 sps:$4 sm:$0xff]   ;;  %v3745_v12 = vld [vmem:[#allocation5 + $0x7e4] ss:$16 sps:$4 sm:$0xff]  }
  0xec   :  { %2206 = vmatprep.subr.bf16.mxu0 %v3655_v11  ;;  %v3740_v11 = vld [vmem:[#allocation5 + $0x3c8] ss:$16 sps:$4 sm:$0xff]  }
  0xed   :  { %2321 = vmatmul.mubr.bf16.vlgmr.msra.gmra.mrb[4].mxu1 %v4309_v6  ;;  %v3676_v6 = vld [vmem:[#allocation5 + $0x26c] ss:$16 sps:$4 sm:$0xff]  }
  0xee   :  { %2198 = vmatmul.mubr.bf16.vlgmr.msra.gmra.mrb[0].mxu0 %v4325_v13  ;;  %2330 = vmatpush1.bf16.msra.mxu1 %v3656_v15  ;;  %v3743_v15 = vld [vmem:[#allocation5 + $0x7e0] ss:$16 sps:$4 sm:$0xff]  }
  0xef   :  { %2207 = vmatpush1.bf16.msra.mxu0 %v3653_v14  ;;  %2331 = vmatprep.subr.bf16.mxu1 %v3664_v17  ;;  %v3748_v14 = vld [vmem:[#allocation5 + $0x3ec] ss:$16 sps:$4 sm:$0xff]   ;;  %v3753_v17 = vld [vmem:[#allocation5 + $0x804] ss:$16 sps:$4 sm:$0xff]  }
  0xf0   :  { %2208 = vmatprep.subr.bf16.mxu0 %v3661_v16  ;;  %2238 = vmatprep.mubr.bf16.mxu0 %v4331_v19  ;;  %v3746_v16 = vld [vmem:[#allocation5 + $0x3e8] ss:$16 sps:$4 sm:$0xff]  }
  0xf1   :  { %2361 = vmatprep.mubr.bf16.mxu1 %v4305_v51  ;;  %v3685_v51 = vld [vmem:[#allocation5 + $0x6a4] ss:$16 sps:$4 sm:$0xff]  }
  0xf2   :  { %2332 = vmatpush1.bf16.msra.mxu1 %v3662_v21  ;;  %v4339_v21 = vcombine.low %v4327_v18, %v4327_v18  ;;  %v3760_v18 = vld [vmem:[#allocation5 + $0x428] ss:$16 sps:$4 sm:$0xff]  }
  0xf3   :  { %2209 = vmatpush1.bf16.msra.mxu0 %v3659_v20  ;;  %2333 = vmatprep.subr.bf16.mxu1 %v3670_v23  ;;  %v3756_v20 = vld [vmem:[#allocation5 + $0x40c] ss:$16 sps:$4 sm:$0xff]   ;;  %v3751_v23 = vld [vmem:[#allocation5 + $0x800] ss:$16 sps:$4 sm:$0xff]  }
  0xf4   :  { %2210 = vmatprep.subr.bf16.mxu0 %v3667_v22  ;;  %v4341_v22 = vld [vmem:[#allocation3 + $0x20] sm:$0xff] }
  0xf6   :  { %2334 = vmatpush1.bf16.msra.mxu1 %v3668_v25  ;;  %v3759_v25 = vld [vmem:[#allocation5 + $0x824] ss:$16 sps:$4 sm:$0xff]  }
  0xf7   :  { %2211 = vmatpush1.bf16.msra.mxu0 %v3665_v24  ;;  %2335 = vmatprep.subr.bf16.mxu1 %v3676_v6  ;;  %v3754_v24 = vld [vmem:[#allocation5 + $0x408] ss:$16 sps:$4 sm:$0xff]   ;;  %v3757_v6 = vld [vmem:[#allocation5 + $0x820] ss:$16 sps:$4 sm:$0xff]  }
  0xf8   :  { %2212 = vmatprep.subr.bf16.mxu0 %v3673_v26  ;;  %v3762_v26 = vld [vmem:[#allocation5 + $0x42c] ss:$16 sps:$4 sm:$0xff]  }
  0xfa   :  { %2336 = vmatpush1.bf16.msra.mxu1 %v3674_v28  ;;  %v3765_v28 = vld [vmem:[#allocation5 + $0x844] ss:$16 sps:$4 sm:$0xff]  }
  0xfb   :  { %2213 = vmatpush1.bf16.msra.mxu0 %v3671_v27  ;;  %2337 = vmatprep.subr.bf16.mxu1 %v3682_v30  ;;  %v4345_v27 = vcombine.high %v4341_v22, %v4341_v22  ;;  %v3763_v30 = vld [vmem:[#allocation5 + $0x840] ss:$16 sps:$4 sm:$0xff]  }
  0xfc   :  { %2214 = vmatprep.subr.bf16.mxu0 %v3679_v29  ;;  %v3768_v29 = vld [vmem:[#allocation5 + $0x44c] ss:$16 sps:$4 sm:$0xff]  }
  0xfe   :  { %2338 = vmatpush1.bf16.msra.mxu1 %v3680_v32  ;;  %v3771_v32 = vld [vmem:[#allocation5 + $0x864] ss:$16 sps:$4 sm:$0xff]  }
  0xff   :  { %2215 = vmatpush1.bf16.msra.mxu0 %v3677_v31  ;;  %2339 = vmatprep.subr.bf16.mxu1 %v3688_v33  ;;  %v3766_v31 = vld [vmem:[#allocation5 + $0x448] ss:$16 sps:$4 sm:$0xff]  }
 0x100   :  { %2216 = vmatprep.subr.bf16.mxu0 %v3685_v51  ;;  %v3774_v51 = vld [vmem:[#allocation5 + $0x46c] ss:$16 sps:$4 sm:$0xff]   ;;  %v3772_v33 = vld [vmem:[#allocation5 + $0x468] ss:$16 sps:$4 sm:$0xff]  }
 0x102   :  { %2340 = vmatpush1.bf16.msra.mxu1 %v3686_v36  ;;  %v3780_v36 = vld [vmem:[#allocation5 + $0x48c] ss:$16 sps:$4 sm:$0xff]  }
 0x103   :  { %2217 = vmatpush1.bf16.msra.mxu0 %v3683_v35  ;;  %2341 = vmatprep.subr.bf16.mxu1 %v3694_v38  ;;  %v3777_v35 = vld [vmem:[#allocation5 + $0x884] ss:$16 sps:$4 sm:$0xff]   ;;  %v3778_v38 = vld [vmem:[#allocation5 + $0x488] ss:$16 sps:$4 sm:$0xff]  }
 0x104   :  { %2218 = vmatprep.subr.bf16.mxu0 %v3691_v37  ;;  %v3775_v37 = vld [vmem:[#allocation5 + $0x880] ss:$16 sps:$4 sm:$0xff]  }
 0x106   :  { %2342 = vmatpush1.bf16.msra.mxu1 %v3692_v40  ;;  %v3781_v40 = vld [vmem:[#allocation5 + $0x8a0] ss:$16 sps:$4 sm:$0xff]  }
 0x107   :  { %2219 = vmatpush1.bf16.msra.mxu0 %v3689_v39  ;;  %2343 = vmatprep.subr.bf16.mxu1 %v3700_v42  ;;  %v3783_v39 = vld [vmem:[#allocation5 + $0x8a4] ss:$16 sps:$4 sm:$0xff]  }
 0x108   :  { %2220 = vmatprep.subr.bf16.mxu0 %v3697_v41  ;;  %v3784_v41 = vld [vmem:[#allocation5 + $0x4a8] ss:$16 sps:$4 sm:$0xff]   ;;  %v3789_v42 = vld [vmem:[#allocation5 + $0x8c4] ss:$16 sps:$4 sm:$0xff]  }
 0x10a   :  { %2344 = vmatpush1.bf16.msra.mxu1 %v3698_v44  ;;  %v3787_v44 = vld [vmem:[#allocation5 + $0x8c0] ss:$16 sps:$4 sm:$0xff]  }
 0x10b   :  { %2221 = vmatpush1.bf16.msra.mxu0 %v3695_v43  ;;  %2345 = vmatprep.subr.bf16.mxu1 %v3706_v46  ;;  %v3792_v43 = vld [vmem:[#allocation5 + $0x4cc] ss:$16 sps:$4 sm:$0xff]   ;;  %v3795_v46 = vld [vmem:[#allocation5 + $0x8e4] ss:$16 sps:$4 sm:$0xff]  }
 0x10c   :  { %2222 = vmatprep.subr.bf16.mxu0 %v3703_v45  ;;  %v3790_v45 = vld [vmem:[#allocation5 + $0x4c8] ss:$16 sps:$4 sm:$0xff]  }
 0x10e   :  { %2346 = vmatpush1.bf16.msra.mxu1 %v3704_v48  ;;  %v3793_v48 = vld [vmem:[#allocation5 + $0x8e0] ss:$16 sps:$4 sm:$0xff]  }
 0x10f   :  { %2223 = vmatpush1.bf16.msra.mxu0 %v3701_v47  ;;  %2347 = vmatprep.subr.bf16.mxu1 %v3712_v50  ;;  %v3798_v47 = vld [vmem:[#allocation5 + $0x4ec] ss:$16 sps:$4 sm:$0xff]   ;;  %v3801_v50 = vld [vmem:[#allocation5 + $0x904] ss:$16 sps:$4 sm:$0xff]  }
 0x110   :  { %2224 = vmatprep.subr.bf16.mxu0 %v3709_v49  ;;  %v3796_v49 = vld [vmem:[#allocation5 + $0x4e8] ss:$16 sps:$4 sm:$0xff]  }
 0x112   :  { %2348 = vmatpush1.bf16.msra.mxu1 %v3710_v53  ;;  %v3799_v53 = vld [vmem:[#allocation5 + $0x900] ss:$16 sps:$4 sm:$0xff]  }
 0x113   :  { %2225 = vmatpush1.bf16.msra.mxu0 %v3707_v52  ;;  %2349 = vmatprep.subr.bf16.mxu1 %v3718_v55  ;;  %v3804_v52 = vld [vmem:[#allocation5 + $0x50c] ss:$16 sps:$4 sm:$0xff]   ;;  %v3807_v55 = vld [vmem:[#allocation5 + $0x924] ss:$16 sps:$4 sm:$0xff]  }
 0x114   :  { %2226 = vmatprep.subr.bf16.mxu0 %v3715_v54  ;;  %v3802_v54 = vld [vmem:[#allocation5 + $0x508] ss:$16 sps:$4 sm:$0xff]  }
 0x116   :  { %2350 = vmatpush1.bf16.msra.mxu1 %v3716_v57  ;;  %v3805_v57 = vld [vmem:[#allocation5 + $0x920] ss:$16 sps:$4 sm:$0xff]  }
 0x117   :  { %2227 = vmatpush1.bf16.msra.mxu0 %v3713_v56  ;;  %2351 = vmatprep.subr.bf16.mxu1 %v3724_v59  ;;  %v3810_v56 = vld [vmem:[#allocation5 + $0x52c] ss:$16 sps:$4 sm:$0xff]   ;;  %v3813_v59 = vld [vmem:[#allocation5 + $0x944] ss:$16 sps:$4 sm:$0xff]  }
 0x118   :  { %2228 = vmatprep.subr.bf16.mxu0 %v3721_v58  ;;  %v3808_v58 = vld [vmem:[#allocation5 + $0x528] ss:$16 sps:$4 sm:$0xff]  }
 0x11a   :  { %2352 = vmatpush1.bf16.msra.mxu1 %v3722_v61  ;;  %v3811_v61 = vld [vmem:[#allocation5 + $0x940] ss:$16 sps:$4 sm:$0xff]  }
 0x11b   :  { %2229 = vmatpush1.bf16.msra.mxu0 %v3719_v60  ;;  %2353 = vmatprep.subr.bf16.mxu1 %v3730_v63  ;;  %v3816_v60 = vld [vmem:[#allocation5 + $0x54c] ss:$16 sps:$4 sm:$0xff]   ;;  %v3819_v63 = vld [vmem:[#allocation5 + $0x964] ss:$16 sps:$4 sm:$0xff]  }
 0x11c   :  { %2230 = vmatprep.subr.bf16.mxu0 %v3727_v62  ;;  %v3814_v62 = vld [vmem:[#allocation5 + $0x548] ss:$16 sps:$4 sm:$0xff]  }
 0x11e   :  { %2354 = vmatpush1.bf16.msra.mxu1 %v3728_v1  ;;  %v3817_v1 = vld [vmem:[#allocation5 + $0x960] ss:$16 sps:$4 sm:$0xff]  }
 0x11f   :  { %2231 = vmatpush1.bf16.msra.mxu0 %v3725_v0  ;;  %2355 = vmatprep.subr.bf16.mxu1 %v3736_v3  ;;  %v3822_v0 = vld [vmem:[#allocation5 + $0x56c] ss:$16 sps:$4 sm:$0xff]   ;;  %v3825_v3 = vld [vmem:[#allocation5 + $0x984] ss:$16 sps:$4 sm:$0xff]  }
 0x120   :  { %2232 = vmatprep.subr.bf16.mxu0 %v3733_v2  ;;  %v3820_v2 = vld [vmem:[#allocation5 + $0x568] ss:$16 sps:$4 sm:$0xff]  }
 0x122   :  { %2356 = vmatpush1.bf16.msra.mxu1 %v3734_v5  ;;  %v3823_v5 = vld [vmem:[#allocation5 + $0x980] ss:$16 sps:$4 sm:$0xff]  }
 0x123   :  { %2233 = vmatpush1.bf16.msra.mxu0 %v3731_v4  ;;  %2357 = vmatprep.subr.bf16.mxu1 %v3742_v9  ;;  %v3828_v4 = vld [vmem:[#allocation5 + $0x58c] ss:$16 sps:$4 sm:$0xff]   ;;  %v3831_v9 = vld [vmem:[#allocation5 + $0x9a4] ss:$16 sps:$4 sm:$0xff]  }
 0x124   :  { %2234 = vmatprep.subr.bf16.mxu0 %v3739_v8  ;;  %v3826_v8 = vld [vmem:[#allocation5 + $0x588] ss:$16 sps:$4 sm:$0xff]  }
 0x126   :  { %2358 = vmatpush1.bf16.msra.mxu1 %v3740_v11  ;;  %v3829_v11 = vld [vmem:[#allocation5 + $0x9a0] ss:$16 sps:$4 sm:$0xff]  }
 0x127   :  { %2235 = vmatpush1.bf16.msra.mxu0 %v3737_v10  ;;  %2359 = vmatprep.subr.bf16.mxu1 %v3748_v14  ;;  %v3834_v10 = vld [vmem:[#allocation5 + $0x5ac] ss:$16 sps:$4 sm:$0xff]   ;;  %v3837_v14 = vld [vmem:[#allocation5 + $0x9c4] ss:$16 sps:$4 sm:$0xff]  }
 0x128   :  { %2236 = vmatprep.subr.bf16.mxu0 %v3745_v12  ;;  %v3832_v12 = vld [vmem:[#allocation5 + $0x5a8] ss:$16 sps:$4 sm:$0xff]  }
 0x12a   :  { %2360 = vmatpush1.bf16.msra.mxu1 %v3746_v16  ;;  %v3835_v16 = vld [vmem:[#allocation5 + $0x9c0] ss:$16 sps:$4 sm:$0xff]  }
 0x12b   :  { %2237 = vmatpush1.bf16.msra.mxu0 %v3743_v15  ;;  %2370 = vmatprep.subr.bf16.mxu1 %v3756_v20  ;;  %v3840_v15 = vld [vmem:[#allocation5 + $0x5cc] ss:$16 sps:$4 sm:$0xff]   ;;  %v3843_v20 = vld [vmem:[#allocation5 + $0x9e4] ss:$16 sps:$4 sm:$0xff]  }
 0x12c   :  { %2247 = vmatprep.subr.bf16.mxu0 %v3753_v17  ;;  %v3838_v17 = vld [vmem:[#allocation5 + $0x5c8] ss:$16 sps:$4 sm:$0xff]  }
 0x12d   :  { %2362 = vmatmul.mubr.bf16.vlgmr.msra.gmra.mrb[4].mxu1 %v4311_v7  ;;  %v3769_v7 = vld [vmem:[#allocation5 + $0x860] ss:$16 sps:$4 sm:$0xff]  }
 0x12e   :  { %2239 = vmatmul.mubr.bf16.vlgmr.msra.gmra.mrb[0].mxu0 %v4339_v21  ;;  %2371 = vmatpush1.bf16.msra.mxu1 %v3754_v24  ;;  %v3841_v24 = vld [vmem:[#allocation5 + $0x9e0] ss:$16 sps:$4 sm:$0xff]  }
 0x12f   :  { %2248 = vmatpush1.bf16.msra.mxu0 %v3751_v23  ;;  %2372 = vmatprep.subr.bf16.mxu1 %v3762_v26  ;;  %v3846_v23 = vld [vmem:[#allocation5 + $0x5ec] ss:$16 sps:$4 sm:$0xff]  }
 0x130   :  { %2249 = vmatprep.subr.bf16.mxu0 %v3759_v25  ;;  %2279 = vmatprep.mubr.bf16.mxu0 %v4345_v27  ;;  %v3844_v25 = vld [vmem:[#allocation5 + $0x5e8] ss:$16 sps:$4 sm:$0xff]   ;;  %v3851_v26 = vld [vmem:[#allocation5 + $0x60c] ss:$16 sps:$4 sm:$0xff]  }
 0x131   :  { %2402 = vmatprep.mubr.bf16.mxu1 %v4320_v34  ;;  %v3786_v34 = vld [vmem:[#allocation5 + $0x4ac] ss:$16 sps:$4 sm:$0xff]  }
 0x132   :  { %2373 = vmatpush1.bf16.msra.mxu1 %v3760_v18  ;;  %v3849_v18 = vld [vmem:[#allocation5 + $0x608] ss:$16 sps:$4 sm:$0xff]  }
 0x133   :  { %2250 = vmatpush1.bf16.msra.mxu0 %v3757_v6  ;;  %2374 = vmatprep.subr.bf16.mxu1 %v3768_v29  ;;  %v4353_v6 = vcombine.low %v4341_v22, %v4341_v22  ;;  %v3945_v29 = vld [vmem:[#allocation8] ss:$8 sps:$4 sm:$0xff]   ;;  %v3948_v22 = vld [vmem:[#allocation8 + $0x10] ss:$8 sps:$4 sm:$0xff]  }
 0x134   :  { %2251 = vmatprep.subr.bf16.mxu0 %v3765_v28  ;;  %v3854_v28 = vld [vmem:[#allocation5 + $0x62c] ss:$16 sps:$4 sm:$0xff]  }
 0x136   :  { %2375 = vmatpush1.bf16.msra.mxu1 %v3766_v31  ;;  %v3852_v31 = vld [vmem:[#allocation5 + $0x628] ss:$16 sps:$4 sm:$0xff]  }
 0x137   :  { %2252 = vmatpush1.bf16.msra.mxu0 %v3763_v30  ;;  %2376 = vmatprep.subr.bf16.mxu1 %v3774_v51  ;;  %v3947_v30 = vld [vmem:[#allocation8 + $0x4] ss:$8 sps:$4 sm:$0xff]   ;;  %v3857_v51 = vld [vmem:[#allocation5 + $0x64c] ss:$16 sps:$4 sm:$0xff]  }
 0x138   :  { %2253 = vmatprep.subr.bf16.mxu0 %v3771_v32  ;;  %v3950_v32 = vld [vmem:[#allocation8 + $0x14] ss:$8 sps:$4 sm:$0xff]  }
 0x13a   :  { %2377 = vmatpush1.bf16.msra.mxu1 %v3772_v33  ;;  %v3855_v33 = vld [vmem:[#allocation5 + $0x648] ss:$16 sps:$4 sm:$0xff]  }
 0x13b   :  { %2254 = vmatpush1.bf16.msra.mxu0 %v3769_v7  ;;  %2378 = vmatprep.subr.bf16.mxu1 %v3780_v36  ;;  %v3953_v7 = vld [vmem:[#allocation8 + $0x24] ss:$8 sps:$4 sm:$0xff]   ;;  %v3956_v36 = vld [vmem:[#allocation8 + $0x34] ss:$8 sps:$4 sm:$0xff]  }
 0x13c   :  { %2255 = vmatprep.subr.bf16.mxu0 %v3777_v35  ;;  %v3860_v35 = vld [vmem:[#allocation5 + $0x66c] ss:$16 sps:$4 sm:$0xff]  }
 0x13e   :  { %2379 = vmatpush1.bf16.msra.mxu1 %v3778_v38  ;;  %v3954_v38 = vld [vmem:[#allocation8 + $0x30] ss:$8 sps:$4 sm:$0xff]  }
 0x13f   :  { %2256 = vmatpush1.bf16.msra.mxu0 %v3775_v37  ;;  %2380 = vmatprep.subr.bf16.mxu1 %v3786_v34  ;;  %v3858_v37 = vld [vmem:[#allocation5 + $0x668] ss:$16 sps:$4 sm:$0xff]  }
 0x140   :  { %2257 = vmatprep.subr.bf16.mxu0 %v3783_v39  ;;  %v3959_v39 = vld [vmem:[#allocation8 + $0x44] ss:$8 sps:$4 sm:$0xff]  }
 0x141   :  { %v3861_v34 = vld [vmem:[#allocation5 + $0x688] ss:$16 sps:$4 sm:$0xff]  }
 0x142   :  { %2381 = vmatpush1.bf16.msra.mxu1 %v3784_v41  ;;  %v3957_v41 = vld [vmem:[#allocation8 + $0x40] ss:$8 sps:$4 sm:$0xff]  }
 0x143   :  { %2258 = vmatpush1.bf16.msra.mxu0 %v3781_v40  ;;  %2382 = vmatprep.subr.bf16.mxu1 %v3792_v43  ;;  %v3866_v40 = vld [vmem:[#allocation5 + $0x6ac] ss:$16 sps:$4 sm:$0xff]   ;;  %v3864_v43 = vld [vmem:[#allocation5 + $0x6a8] ss:$16 sps:$4 sm:$0xff]  }
 0x144   :  { %2259 = vmatprep.subr.bf16.mxu0 %v3789_v42  ;;  %v3962_v42 = vld [vmem:[#allocation8 + $0x54] ss:$8 sps:$4 sm:$0xff]  }
 0x146   :  { %2383 = vmatpush1.bf16.msra.mxu1 %v3790_v45 }
 0x147   :  { %2260 = vmatpush1.bf16.msra.mxu0 %v3787_v44  ;;  %2384 = vmatprep.subr.bf16.mxu1 %v3798_v47  ;;  %v3869_v44 = vld [vmem:[#allocation5 + $0x6cc] ss:$16 sps:$4 sm:$0xff]  }
 0x148   :  { %2261 = vmatprep.subr.bf16.mxu0 %v3795_v46  ;;  %v3960_v46 = vld [vmem:[#allocation8 + $0x50] ss:$8 sps:$4 sm:$0xff]  }
 0x14a   :  { %2385 = vmatpush1.bf16.msra.mxu1 %v3796_v49 }
 0x14b   :  { %2262 = vmatpush1.bf16.msra.mxu0 %v3793_v48  ;;  %2386 = vmatprep.subr.bf16.mxu1 %v3804_v52  ;;  %v3965_v48 = vld [vmem:[#allocation8 + $0x64] ss:$8 sps:$4 sm:$0xff]  }
 0x14c   :  { %2263 = vmatprep.subr.bf16.mxu0 %v3801_v50  ;;  %v3867_v50 = vld [vmem:[#allocation5 + $0x6c8] ss:$16 sps:$4 sm:$0xff]  }
 0x14e   :  { %2387 = vmatpush1.bf16.msra.mxu1 %v3802_v54  ;;  %v3963_v54 = vld [vmem:[#allocation8 + $0x60] ss:$8 sps:$4 sm:$0xff]  }
 0x14f   :  { %2264 = vmatpush1.bf16.msra.mxu0 %v3799_v53  ;;  %2388 = vmatprep.subr.bf16.mxu1 %v3810_v56  ;;  %v3872_v53 = vld [vmem:[#allocation5 + $0x6ec] ss:$16 sps:$4 sm:$0xff]   ;;  %v3870_v56 = vld [vmem:[#allocation5 + $0x6e8] ss:$16 sps:$4 sm:$0xff]  }
 0x150   :  { %2265 = vmatprep.subr.bf16.mxu0 %v3807_v55  ;;  %v3968_v55 = vld [vmem:[#allocation8 + $0x74] ss:$8 sps:$4 sm:$0xff]  }
 0x152   :  { %2389 = vmatpush1.bf16.msra.mxu1 %v3808_v58  ;;  %v3966_v58 = vld [vmem:[#allocation8 + $0x70] ss:$8 sps:$4 sm:$0xff]  }
 0x153   :  { %2266 = vmatpush1.bf16.msra.mxu0 %v3805_v57  ;;  %2390 = vmatprep.subr.bf16.mxu1 %v3816_v60  ;;  %v3875_v57 = vld [vmem:[#allocation5 + $0x70c] ss:$16 sps:$4 sm:$0xff]   ;;  %v3873_v60 = vld [vmem:[#allocation5 + $0x708] ss:$16 sps:$4 sm:$0xff]  }
 0x154   :  { %2267 = vmatprep.subr.bf16.mxu0 %v3813_v59  ;;  %v3971_v59 = vld [vmem:[#allocation8 + $0x84] ss:$8 sps:$4 sm:$0xff]  }
 0x156   :  { %2391 = vmatpush1.bf16.msra.mxu1 %v3814_v62  ;;  %v3969_v62 = vld [vmem:[#allocation8 + $0x80] ss:$8 sps:$4 sm:$0xff]  }
 0x157   :  { %2268 = vmatpush1.bf16.msra.mxu0 %v3811_v61  ;;  %2392 = vmatprep.subr.bf16.mxu1 %v3822_v0  ;;  %v3878_v61 = vld [vmem:[#allocation5 + $0x72c] ss:$16 sps:$4 sm:$0xff]   ;;  %v3876_v0 = vld [vmem:[#allocation5 + $0x728] ss:$16 sps:$4 sm:$0xff]  }
 0x158   :  { %2269 = vmatprep.subr.bf16.mxu0 %v3819_v63  ;;  %v3974_v63 = vld [vmem:[#allocation8 + $0x94] ss:$8 sps:$4 sm:$0xff]  }
 0x15a   :  { %2393 = vmatpush1.bf16.msra.mxu1 %v3820_v2  ;;  %v3972_v2 = vld [vmem:[#allocation8 + $0x90] ss:$8 sps:$4 sm:$0xff]  }
 0x15b   :  { %2270 = vmatpush1.bf16.msra.mxu0 %v3817_v1  ;;  %2394 = vmatprep.subr.bf16.mxu1 %v3828_v4  ;;  %v3881_v1 = vld [vmem:[#allocation5 + $0x74c] ss:$16 sps:$4 sm:$0xff]   ;;  %v3879_v4 = vld [vmem:[#allocation5 + $0x748] ss:$16 sps:$4 sm:$0xff]  }
 0x15c   :  { %2271 = vmatprep.subr.bf16.mxu0 %v3825_v3  ;;  %v3977_v3 = vld [vmem:[#allocation8 + $0xa4] ss:$8 sps:$4 sm:$0xff]  }
 0x15e   :  { %2395 = vmatpush1.bf16.msra.mxu1 %v3826_v8  ;;  %v3975_v8 = vld [vmem:[#allocation8 + $0xa0] ss:$8 sps:$4 sm:$0xff]  }
 0x15f   :  { %2272 = vmatpush1.bf16.msra.mxu0 %v3823_v5  ;;  %2396 = vmatprep.subr.bf16.mxu1 %v3834_v10  ;;  %v3884_v5 = vld [vmem:[#allocation5 + $0x76c] ss:$16 sps:$4 sm:$0xff]   ;;  %v3882_v10 = vld [vmem:[#allocation5 + $0x768] ss:$16 sps:$4 sm:$0xff]  }
 0x160   :  { %2273 = vmatprep.subr.bf16.mxu0 %v3831_v9  ;;  %v3980_v9 = vld [vmem:[#allocation8 + $0xb4] ss:$8 sps:$4 sm:$0xff]  }
 0x162   :  { %2397 = vmatpush1.bf16.msra.mxu1 %v3832_v12  ;;  %v3978_v12 = vld [vmem:[#allocation8 + $0xb0] ss:$8 sps:$4 sm:$0xff]  }
 0x163   :  { %2274 = vmatpush1.bf16.msra.mxu0 %v3829_v11  ;;  %2398 = vmatprep.subr.bf16.mxu1 %v3840_v15  ;;  %v3887_v11 = vld [vmem:[#allocation5 + $0x78c] ss:$16 sps:$4 sm:$0xff]   ;;  %v3885_v15 = vld [vmem:[#allocation5 + $0x788] ss:$16 sps:$4 sm:$0xff]  }
 0x164   :  { %2275 = vmatprep.subr.bf16.mxu0 %v3837_v14  ;;  %v3983_v14 = vld [vmem:[#allocation8 + $0xc4] ss:$8 sps:$4 sm:$0xff]  }
 0x166   :  { %2399 = vmatpush1.bf16.msra.mxu1 %v3838_v17  ;;  %v3981_v17 = vld [vmem:[#allocation8 + $0xc0] ss:$8 sps:$4 sm:$0xff]  }
 0x167   :  { %2276 = vmatpush1.bf16.msra.mxu0 %v3835_v16  ;;  %2400 = vmatprep.subr.bf16.mxu1 %v3846_v23  ;;  %v3890_v16 = vld [vmem:[#allocation5 + $0x7ac] ss:$16 sps:$4 sm:$0xff]   ;;  %v3888_v23 = vld [vmem:[#allocation5 + $0x7a8] ss:$16 sps:$4 sm:$0xff]  }
 0x168   :  { %2277 = vmatprep.subr.bf16.mxu0 %v3843_v20  ;;  %v3986_v20 = vld [vmem:[#allocation8 + $0xd4] ss:$8 sps:$4 sm:$0xff]  }
 0x16a   :  { %2401 = vmatpush1.bf16.msra.mxu1 %v3844_v25  ;;  %v3984_v25 = vld [vmem:[#allocation8 + $0xd0] ss:$8 sps:$4 sm:$0xff]  }
 0x16b   :  { %2278 = vmatpush1.bf16.msra.mxu0 %v3841_v24  ;;  %2411 = vmatprep.subr.bf16.mxu1 %v3851_v26  ;;  %v3893_v24 = vld [vmem:[#allocation5 + $0x7cc] ss:$16 sps:$4 sm:$0xff]   ;;  %v3891_v26 = vld [vmem:[#allocation5 + $0x7c8] ss:$16 sps:$4 sm:$0xff]  }
 0x16c   :  { %2897 = vmatprep.subr.bf16.mxu0 %v3947_v30  ;;  %v3897_v30 = vld [vmem:[#allocation5 + $0x808] ss:$16 sps:$4 sm:$0xff]  }
 0x16d   :  { %2403 = vmatmul.mubr.bf16.vlgmr.msra.gmra.mrb[4].mxu1 %v4325_v13  ;;  %v3951_v13 = vld [vmem:[#allocation8 + $0x20] ss:$8 sps:$4 sm:$0xff]  }
 0x16e   :  { %2280 = vmatmul.mubr.bf16.vlgmr.msra.gmra.mrb[0].mxu0 %v4353_v6  ;;  %2412 = vmatpush1.bf16.msra.mxu1 %v3849_v18  ;;  %v3896_v18 = vld [vmem:[#allocation5 + $0x7ec] ss:$16 sps:$4 sm:$0xff]  }
 0x16f   :  { %2443 = vmatprep.mubr.bf16.mxu1 %v4331_v19  ;;  %2413 = vmatprep.subr.bf16.mxu1 %v3854_v28  ;;  %v3863_v19 = vld [vmem:[#allocation5 + $0x68c] ss:$16 sps:$4 sm:$0xff]   ;;  %v3894_v28 = vld [vmem:[#allocation5 + $0x7e8] ss:$16 sps:$4 sm:$0xff]  }
 0x170   :  { %2898 = vmatpush1.bf16.msra.mxu0 %v3945_v29  ;;  %v3899_v29 = vld [vmem:[#allocation5 + $0x80c] ss:$16 sps:$4 sm:$0xff]  }
 0x171   :  { %2899 = vmatprep.subr.bf16.mxu0 %v3950_v32  ;;  %v3900_v32 = vld [vmem:[#allocation5 + $0x828] ss:$16 sps:$4 sm:$0xff]  }
 0x172   :  { %2414 = vmatpush1.bf16.msra.mxu1 %v3852_v31  ;;  %v3902_v31 = vld [vmem:[#allocation5 + $0x82c] ss:$16 sps:$4 sm:$0xff]  }
 0x173   :  { %2415 = vmatprep.subr.bf16.mxu1 %v3857_v51  ;;  %v3905_v51 = vld [vmem:[#allocation5 + $0x84c] ss:$16 sps:$4 sm:$0xff]  }
 0x174   :  { %2900 = vmatpush1.bf16.msra.mxu0 %v3948_v22  ;;  %v3903_v22 = vld [vmem:[#allocation5 + $0x848] ss:$16 sps:$4 sm:$0xff]  }
 0x175   :  { %2901 = vmatprep.subr.bf16.mxu0 %v3953_v7  ;;  %v3908_v7 = vld [vmem:[#allocation5 + $0x86c] ss:$16 sps:$4 sm:$0xff]  }
 0x176   :  { %2416 = vmatpush1.bf16.msra.mxu1 %v3855_v33  ;;  %v3906_v33 = vld [vmem:[#allocation5 + $0x868] ss:$16 sps:$4 sm:$0xff]  }
 0x177   :  { %2417 = vmatprep.subr.bf16.mxu1 %v3860_v35  ;;  %v3911_v35 = vld [vmem:[#allocation5 + $0x88c] ss:$16 sps:$4 sm:$0xff]  }
 0x178   :  { %2902 = vmatpush1.bf16.msra.mxu0 %v3951_v13  ;;  %v3909_v13 = vld [vmem:[#allocation5 + $0x888] ss:$16 sps:$4 sm:$0xff]  }
 0x179   :  { %2903 = vmatprep.subr.bf16.mxu0 %v3956_v36  ;;  %v3914_v36 = vld [vmem:[#allocation5 + $0x8ac] ss:$16 sps:$4 sm:$0xff]  }
 0x17a   :  { %2418 = vmatpush1.bf16.msra.mxu1 %v3858_v37  ;;  %v3917_v37 = vld [vmem:[#allocation5 + $0x8cc] ss:$16 sps:$4 sm:$0xff]  }
 0x17b   :  { %2419 = vmatprep.subr.bf16.mxu1 %v3863_v19  ;;  %v3989_v19 = vld [vmem:[#allocation8 + $0xe4] ss:$8 sps:$4 sm:$0xff]  }
 0x17c   :  { %2904 = vmatpush1.bf16.msra.mxu0 %v3954_v38  ;;  %v3915_v38 = vld [vmem:[#allocation5 + $0x8c8] ss:$16 sps:$4 sm:$0xff]  }
 0x17d   :  { %2905 = vmatprep.subr.bf16.mxu0 %v3959_v39  ;;  %v3920_v39 = vld [vmem:[#allocation5 + $0x8ec] ss:$16 sps:$4 sm:$0xff]  }
 0x17e   :  { %2420 = vmatpush1.bf16.msra.mxu1 %v3861_v34  ;;  %v3992_v34 = vld [vmem:[#allocation8 + $0xf4] ss:$8 sps:$4 sm:$0xff]  }
 0x17f   :  { %2421 = vmatprep.subr.bf16.mxu1 %v3866_v40  ;;  %v3990_v40 = vld [vmem:[#allocation8 + $0xf0] ss:$8 sps:$4 sm:$0xff]  }
 0x180   :  { %v4358_v45 = vpop.f32.mrb[0].mxu1  ;;  %2906 = vmatpush1.bf16.msra.mxu0 %v3957_v41  ;;  %v3918_v41 = vld [vmem:[#allocation5 + $0x8e8] ss:$16 sps:$4 sm:$0xff]  }
 0x181   :  { %v4360_v47 = vpop.f32.mrb[1].mxu1  ;;  %2907 = vmatprep.subr.bf16.mxu0 %v3962_v42  ;;  %v3923_v42 = vld [vmem:[#allocation5 + $0x90c] ss:$16 sps:$4 sm:$0xff]  }
 0x182   :  { %v2121_v49 = vpop.f32.mrb[2].mxu1  ;;  %2422 = vmatpush1.bf16.msra.mxu1 %v3864_v43  ;;  %v3995_v43 = vld [vmem:[#allocation8 + $0x104] ss:$8 sps:$4 sm:$0xff]  }
 0x183   :  { %v2122_v52 = vpop.f32.mrb[3].mxu1  ;;  %2423 = vmatprep.subr.bf16.mxu1 %v3869_v44  ;;  %v3921_v44 = vld [vmem:[#allocation5 + $0x908] ss:$16 sps:$4 sm:$0xff]   ;;  %v3929_v49 = vld [vmem:[#allocation5 + $0x94c] ss:$16 sps:$4 sm:$0xff]  }
 0x184   :  { %2908 = vmatpush1.bf16.msra.mxu0 %v3960_v46  ;;  %v3926_v46 = vld [vmem:[#allocation5 + $0x92c] ss:$16 sps:$4 sm:$0xff]  }
 0x185   :  { %2909 = vmatprep.subr.bf16.mxu0 %v3965_v48  ;;  %v3924_v48 = vld [vmem:[#allocation5 + $0x928] ss:$16 sps:$4 sm:$0xff]   ;;  %v3932_v52 = vld [vmem:[#allocation5 + $0x96c] ss:$16 sps:$4 sm:$0xff]  }
 0x186   :  { %2424 = vmatpush1.bf16.msra.mxu1 %v3867_v50  ;;  %v3927_v50 = vld [vmem:[#allocation5 + $0x948] ss:$16 sps:$4 sm:$0xff]  }
 0x187   :  { %2425 = vmatprep.subr.bf16.mxu1 %v3872_v53  ;;  %v3930_v53 = vld [vmem:[#allocation5 + $0x968] ss:$16 sps:$4 sm:$0xff]  }
 0x188   :  { %2910 = vmatpush1.bf16.msra.mxu0 %v3963_v54  ;;  %v3935_v54 = vld [vmem:[#allocation5 + $0x98c] ss:$16 sps:$4 sm:$0xff]  }
 0x189   :  { %2911 = vmatprep.subr.bf16.mxu0 %v3968_v55  ;;  %v3933_v55 = vld [vmem:[#allocation5 + $0x988] ss:$16 sps:$4 sm:$0xff]  }
 0x18a   :  { %2426 = vmatpush1.bf16.msra.mxu1 %v3870_v56  ;;  %v3938_v56 = vld [vmem:[#allocation5 + $0x9ac] ss:$16 sps:$4 sm:$0xff]  }
 0x18b   :  { %2427 = vmatprep.subr.bf16.mxu1 %v3875_v57  ;;  %v3936_v57 = vld [vmem:[#allocation5 + $0x9a8] ss:$16 sps:$4 sm:$0xff]  }
 0x18c   :  { %2912 = vmatpush1.bf16.msra.mxu0 %v3966_v58  ;;  %v3941_v58 = vld [vmem:[#allocation5 + $0x9cc] ss:$16 sps:$4 sm:$0xff]  }
 0x18d   :  { %2913 = vmatprep.subr.bf16.mxu0 %v3971_v59  ;;  %v3939_v59 = vld [vmem:[#allocation5 + $0x9c8] ss:$16 sps:$4 sm:$0xff]  }
 0x18e   :  { %2428 = vmatpush1.bf16.msra.mxu1 %v3873_v60  ;;  %v3944_v60 = vld [vmem:[#allocation5 + $0x9ec] ss:$16 sps:$4 sm:$0xff]  }
 0x18f   :  { %2429 = vmatprep.subr.bf16.mxu1 %v3878_v61  ;;  %v3942_v61 = vld [vmem:[#allocation5 + $0x9e8] ss:$16 sps:$4 sm:$0xff]  }
 0x190   :  { %2914 = vmatpush1.bf16.msra.mxu0 %v3969_v62  ;;  %v428_v62 = vlaneseq }
 0x191   :  { %2915 = vmatprep.subr.bf16.mxu0 %v3974_v63 }
 0x192   :  { %2430 = vmatpush1.bf16.msra.mxu1 %v3876_v0  ;;  %v4365_v63 = vshrl.u32 %v428_v62, 7  ;;  %v2565_v62 = vld [vmem:[#allocation10] sm:$0x3] }
 0x193   :  { %2431 = vmatprep.subr.bf16.mxu1 %v3881_v1  ;;  %v4370_v1 = vld [vmem:[#allocation7] sm:$0xf] }
 0x194   :  { %2916 = vmatpush1.bf16.msra.mxu0 %v3972_v2  ;;  %v4368_v0 = vsub.s32 0, %v4365_v63  ;;  %v4373_v2 = vsub.s32 1, %v4365_v63 }
 0x195   :  { %2917 = vmatprep.subr.bf16.mxu0 %v3977_v3 }
 0x196   :  { %2432 = vmatpush1.bf16.msra.mxu1 %v3879_v4  ;;  %v431_v3 = vrot.slane %v4370_v1, %v4368_v0  ;;  %v435_v4 = vrot.slane %v4370_v1, %v4373_v2 }
 0x197   :  { %2433 = vmatprep.subr.bf16.mxu1 %v3884_v5 }
 0x198   :  { %2918 = vmatpush1.bf16.msra.mxu0 %v3975_v8  ;;  %v2118_v5 = vadd.f32 %v4358_v45, %v431_v3  ;;  %v4001_v45 = vld [vmem:[#allocation8 + $0x124] ss:$8 sps:$4 sm:$0xff]   ;;  %v2570_v3 = vrot.slane %v2565_v62, %v4368_v0 }
 0x199   :  { %2919 = vmatprep.subr.bf16.mxu0 %v3980_v9 }
 0x19a   :  { %2434 = vmatpush1.bf16.msra.mxu1 %v3882_v10 }
 0x19b   :  { %2435 = vmatprep.subr.bf16.mxu1 %v3887_v11 }
 0x19c   :  { %2920 = vmatpush1.bf16.msra.mxu0 %v3978_v12 }
 0x19d   :  { %2921 = vmatprep.subr.bf16.mxu0 %v3983_v14 }
 0x19e   :  { %2436 = vmatpush1.bf16.msra.mxu1 %v3885_v15 }
 0x19f   :  { %2437 = vmatprep.subr.bf16.mxu1 %v3890_v16 }
 0x1a0   :  { %2922 = vmatpush1.bf16.msra.mxu0 %v3981_v17 }
 0x1a1   :  { %2923 = vmatprep.subr.bf16.mxu0 %v3986_v20  ;;  %v3993_v20 = vld [vmem:[#allocation8 + $0x100] ss:$8 sps:$4 sm:$0xff]  }
 0x1a2   :  { %2438 = vmatpush1.bf16.msra.mxu1 %v3888_v23 }
 0x1a3   :  { %2439 = vmatprep.subr.bf16.mxu1 %v3893_v24  ;;  %v3998_v24 = vld [vmem:[#allocation8 + $0x114] ss:$8 sps:$4 sm:$0xff]  }
 0x1a4   :  { %2924 = vmatpush1.bf16.msra.mxu0 %v3984_v25  ;;  %v3996_v25 = vld [vmem:[#allocation8 + $0x110] ss:$8 sps:$4 sm:$0xff]  }
 0x1a5   :  { %2925 = vmatprep.subr.bf16.mxu0 %v3989_v19  ;;  %v4028_v19 = vld [vmem:[#allocation8 + $0x1b4] ss:$8 sps:$4 sm:$0xff]  }
 0x1a6   :  { %2440 = vmatpush1.bf16.msra.mxu1 %v3891_v26  ;;  %v4004_v26 = vld [vmem:[#allocation8 + $0x134] ss:$8 sps:$4 sm:$0xff]  }
 0x1a7   :  { %2441 = vmatprep.subr.bf16.mxu1 %v3896_v18  ;;  %v4002_v18 = vld [vmem:[#allocation8 + $0x130] ss:$8 sps:$4 sm:$0xff]  }
 0x1aa   :  { %2442 = vmatpush1.bf16.msra.mxu1 %v3894_v28  ;;  %v4007_v28 = vld [vmem:[#allocation8 + $0x144] ss:$8 sps:$4 sm:$0xff]  }
 0x1ab   :  { %2452 = vmatprep.subr.bf16.mxu1 %v3899_v29  ;;  %v4005_v29 = vld [vmem:[#allocation8 + $0x140] ss:$8 sps:$4 sm:$0xff]  }
 0x1ad   :  { %2444 = vmatmul.mubr.bf16.vlgmr.msra.gmra.mrb[4].mxu1 %v4339_v21  ;;  %v3912_v21 = vld [vmem:[#allocation5 + $0x8a8] ss:$16 sps:$4 sm:$0xff]  }
 0x1ae   :  { %2453 = vmatpush1.bf16.msra.mxu1 %v3897_v30  ;;  %2484 = vmatprep.mubr.bf16.mxu1 %v4345_v27  ;;  %v3987_v27 = vld [vmem:[#allocation8 + $0xe0] ss:$8 sps:$4 sm:$0xff]   ;;  %v4010_v30 = vld [vmem:[#allocation8 + $0x154] ss:$8 sps:$4 sm:$0xff]  }
 0x1af   :  { %2454 = vmatprep.subr.bf16.mxu1 %v3902_v31  ;;  %2926 = vmatpush1.bf16.msra.mxu0 %v3987_v27  ;;  %v4008_v31 = vld [vmem:[#allocation8 + $0x150] ss:$8 sps:$4 sm:$0xff]  }
 0x1b0   :  { %2927 = vmatprep.subr.bf16.mxu0 %v3992_v34  ;;  %v4026_v27 = vld [vmem:[#allocation8 + $0x1b0] ss:$8 sps:$4 sm:$0xff]   ;;  %v4034_v34 = vld [vmem:[#allocation8 + $0x1d4] ss:$8 sps:$4 sm:$0xff]  }
 0x1b2   :  { %2455 = vmatpush1.bf16.msra.mxu1 %v3900_v32  ;;  %v4013_v32 = vld [vmem:[#allocation8 + $0x164] ss:$8 sps:$4 sm:$0xff]  }
 0x1b3   :  { %2456 = vmatprep.subr.bf16.mxu1 %v3905_v51  ;;  %2928 = vmatpush1.bf16.msra.mxu0 %v3990_v40  ;;  %v4011_v51 = vld [vmem:[#allocation8 + $0x160] ss:$8 sps:$4 sm:$0xff]   ;;  %v4032_v40 = vld [vmem:[#allocation8 + $0x1d0] ss:$8 sps:$4 sm:$0xff]  }
 0x1b4   :  { %2938 = vmatprep.subr.bf16.mxu0 %v3995_v43  ;;  %v4040_v43 = vld [vmem:[#allocation8 + $0x1f4] ss:$8 sps:$4 sm:$0xff]  }
 0x1b6   :  { %2457 = vmatpush1.bf16.msra.mxu1 %v3903_v22  ;;  %v4016_v22 = vld [vmem:[#allocation8 + $0x174] ss:$8 sps:$4 sm:$0xff]  }
 0x1b7   :  { %2458 = vmatprep.subr.bf16.mxu1 %v3908_v7  ;;  %v4014_v7 = vld [vmem:[#allocation8 + $0x170] ss:$8 sps:$4 sm:$0xff]  }
 0x1ba   :  { %2459 = vmatpush1.bf16.msra.mxu1 %v3906_v33  ;;  %v4019_v33 = vld [vmem:[#allocation8 + $0x184] ss:$8 sps:$4 sm:$0xff]  }
 0x1bb   :  { %2460 = vmatprep.subr.bf16.mxu1 %v3911_v35  ;;  %v4017_v35 = vld [vmem:[#allocation8 + $0x180] ss:$8 sps:$4 sm:$0xff]  }
 0x1be   :  { %2461 = vmatpush1.bf16.msra.mxu1 %v3909_v13  ;;  %v4022_v13 = vld [vmem:[#allocation8 + $0x194] ss:$8 sps:$4 sm:$0xff]  }
 0x1bf   :  { %2462 = vmatprep.subr.bf16.mxu1 %v3914_v36  ;;  %v4020_v36 = vld [vmem:[#allocation8 + $0x190] ss:$8 sps:$4 sm:$0xff]  }
 0x1c2   :  { %2463 = vmatpush1.bf16.msra.mxu1 %v3912_v21  ;;  %v4025_v21 = vld [vmem:[#allocation8 + $0x1a4] ss:$8 sps:$4 sm:$0xff]  }
 0x1c3   :  { %2464 = vmatprep.subr.bf16.mxu1 %v3917_v37  ;;  %v4023_v37 = vld [vmem:[#allocation8 + $0x1a0] ss:$8 sps:$4 sm:$0xff]  }
 0x1c6   :  { %2465 = vmatpush1.bf16.msra.mxu1 %v3915_v38  ;;  %v4031_v38 = vld [vmem:[#allocation8 + $0x1c4] ss:$8 sps:$4 sm:$0xff]  }
 0x1c7   :  { %2466 = vmatprep.subr.bf16.mxu1 %v3920_v39  ;;  %v4029_v39 = vld [vmem:[#allocation8 + $0x1c0] ss:$8 sps:$4 sm:$0xff]  }
 0x1ca   :  { %2467 = vmatpush1.bf16.msra.mxu1 %v3918_v41  ;;  %v4037_v41 = vld [vmem:[#allocation8 + $0x1e4] ss:$8 sps:$4 sm:$0xff]  }
 0x1cb   :  { %2468 = vmatprep.subr.bf16.mxu1 %v3923_v42  ;;  %v4035_v42 = vld [vmem:[#allocation8 + $0x1e0] ss:$8 sps:$4 sm:$0xff]  }
 0x1ce   :  { %2469 = vmatpush1.bf16.msra.mxu1 %v3921_v44  ;;  %v4038_v44 = vld [vmem:[#allocation8 + $0x1f0] ss:$8 sps:$4 sm:$0xff]  }
 0x1cf   :  { %2470 = vmatprep.subr.bf16.mxu1 %v3926_v46  ;;  %v438_v46 = vsub.s32 2, %v4365_v63 }
 0x1d2   :  { %2471 = vmatpush1.bf16.msra.mxu1 %v3924_v48  ;;  %v442_v48 = vsub.s32 3, %v4365_v63  ;;  %v2574_v63 = vrot.slane %v2565_v62, %v4373_v2 }
 0x1d3   :  { %2472 = vmatprep.subr.bf16.mxu1 %v3929_v49  ;;  %v439_v49 = vrot.slane %v4370_v1, %v438_v46 }
 0x1d6   :  { %2473 = vmatpush1.bf16.msra.mxu1 %v3927_v50  ;;  %v443_v50 = vrot.slane %v4370_v1, %v442_v48 }
 0x1d7   :  { %2474 = vmatprep.subr.bf16.mxu1 %v3932_v52 }
 0x1da   :  { %2475 = vmatpush1.bf16.msra.mxu1 %v3930_v53 }
 0x1db   :  { %2476 = vmatprep.subr.bf16.mxu1 %v3935_v54 }
 0x1de   :  { %2477 = vmatpush1.bf16.msra.mxu1 %v3933_v55 }
 0x1df   :  { %2478 = vmatprep.subr.bf16.mxu1 %v3938_v56 }
 0x1e2   :  { %2479 = vmatpush1.bf16.msra.mxu1 %v3936_v57 }
 0x1e3   :  { %2480 = vmatprep.subr.bf16.mxu1 %v3941_v58 }
 0x1e6   :  { %2481 = vmatpush1.bf16.msra.mxu1 %v3939_v59 }
 0x1e7   :  { %2482 = vmatprep.subr.bf16.mxu1 %v3944_v60 }
 0x1ea   :  { %2483 = vmatpush1.bf16.msra.mxu1 %v3942_v61 }
 0x1ed   :  { %2485 = vmatmul.mubr.bf16.vlgmr.msra.gmra.mrb[4].mxu1 %v4353_v6  ;;  %v2120_v6 = vadd.f32 %v4360_v47, %v435_v4  ;;  %v3999_v47 = vld [vmem:[#allocation8 + $0x120] ss:$8 sps:$4 sm:$0xff]  }
 0x1ee   :  { %v2981_v4 = vld [vmem:[#allocation11] sm:$0x3] }
 0x241   :  { %v2281_v8 = vpop.f32.mrb[0].mxu0 }
 0x242   :  { %v3406_v9 = vadd.f32 %v2281_v8, %v2118_v5  ;;  %v2283_v10 = vpop.f32.mrb[1].mxu0  ;;  %v2986_v8 = vrot.slane %v2981_v4, %v4368_v0 }
 0x243   :  { %v3408_v11 = vadd.f32 %v2283_v10, %v2120_v6  ;;  %v2285_v12 = vpop.f32.mrb[2].mxu0 }
 0x244   :  { %v2493_v14 = vmax.f32 %v3406_v9, 0.0  ;;  %v2286_v15 = vpop.f32.mrb[3].mxu0 }
 0x245   :  { %v2494_v16 = vmax.f32 %v3408_v11, 0.0  ;;  %v2990_v11 = vrot.slane %v2981_v4, %v4373_v2 }
 0x246   :  { %v2497_v23 = vpack.c.bf16 %v2493_v14, %v2493_v14 }
 0x247   :  { %v2498_v17 = vpack.c.bf16 %v2494_v16, %v2494_v16 }
 0x249   :  { %2929 = vmatprep.mubr.bf16.mxu0 %v2498_v17 }
 0x24a   :  { %2930 = vmatmul.mubr.bf16.vlgmr.msra.gmra.mrb[4].mxu0 %v2497_v23  ;;  %v2999_v23 = vstv %s4401_s6 }
 0x24b   :  { %2939 = vmatpush1.bf16.msra.mxu0 %v3993_v20 }
 0x24c   :  { %2940 = vmatprep.subr.bf16.mxu0 %v3998_v24 }
 0x24f   :  { %2941 = vmatpush1.bf16.msra.mxu0 %v3996_v25 }
 0x250   :  { %2942 = vmatprep.subr.bf16.mxu0 %v4001_v45 }
 0x253   :  { %2943 = vmatpush1.bf16.msra.mxu0 %v3999_v47 }
 0x254   :  { %2944 = vmatprep.subr.bf16.mxu0 %v4004_v26 }
 0x257   :  { %2945 = vmatpush1.bf16.msra.mxu0 %v4002_v18 }
 0x258   :  { %2946 = vmatprep.subr.bf16.mxu0 %v4007_v28 }
 0x25b   :  { %2947 = vmatpush1.bf16.msra.mxu0 %v4005_v29 }
 0x25c   :  { %2948 = vmatprep.subr.bf16.mxu0 %v4010_v30 }
 0x25f   :  { %2949 = vmatpush1.bf16.msra.mxu0 %v4008_v31 }
 0x260   :  { %2950 = vmatprep.subr.bf16.mxu0 %v4013_v32 }
 0x263   :  { %2951 = vmatpush1.bf16.msra.mxu0 %v4011_v51 }
 0x264   :  { %2952 = vmatprep.subr.bf16.mxu0 %v4016_v22 }
 0x267   :  { %2953 = vmatpush1.bf16.msra.mxu0 %v4014_v7 }
 0x268   :  { %2954 = vmatprep.subr.bf16.mxu0 %v4019_v33 }
 0x26b   :  { %2955 = vmatpush1.bf16.msra.mxu0 %v4017_v35 }
 0x26c   :  { %2956 = vmatprep.subr.bf16.mxu0 %v4022_v13 }
 0x26f   :  { %2957 = vmatpush1.bf16.msra.mxu0 %v4020_v36 }
 0x270   :  { %2958 = vmatprep.subr.bf16.mxu0 %v4025_v21 }
 0x273   :  { %2959 = vmatpush1.bf16.msra.mxu0 %v4023_v37 }
 0x274   :  { %2960 = vmatprep.subr.bf16.mxu0 %v4028_v19 }
 0x277   :  { %2961 = vmatpush1.bf16.msra.mxu0 %v4026_v27 }
 0x278   :  { %2962 = vmatprep.subr.bf16.mxu0 %v4031_v38 }
 0x27b   :  { %2963 = vmatpush1.bf16.msra.mxu0 %v4029_v39 }
 0x27c   :  { %2964 = vmatprep.subr.bf16.mxu0 %v4034_v34 }
 0x27f   :  { %2965 = vmatpush1.bf16.msra.mxu0 %v4032_v40 }
 0x280   :  { %2966 = vmatprep.subr.bf16.mxu0 %v4037_v41 }
 0x283   :  { %2967 = vmatpush1.bf16.msra.mxu0 %v4035_v42 }
 0x284   :  { %2968 = vmatprep.subr.bf16.mxu0 %v4040_v43 }
 0x287   :  { %2969 = vmatpush1.bf16.msra.mxu0 %v4038_v44 }
 0x2c0   :  { %v2486_v52 = vpop.f32.mrb[4].mxu1 }
 0x2c1   :  { %v3409_v53 = vadd.f32 %v2486_v52, %v439_v49  ;;  %v2488_v54 = vpop.f32.mrb[5].mxu1 }
 0x2c2   :  { %v3410_v55 = vadd.f32 %v2488_v54, %v443_v50  ;;  %v2490_v56 = vpop.f32.mrb[6].mxu1 }
 0x2c3   :  { %v2495_v57 = vmax.f32 %v3409_v53, 0.0  ;;  %v2491_v58 = vpop.f32.mrb[7].mxu1 }
 0x2c4   :  { %v2496_v59 = vmax.f32 %v3410_v55, 0.0 }
 0x2c5   :  { %v2499_v61 = vpack.c.bf16 %v2495_v57, %v2495_v57 }
 0x2c6   :  { %v2500_v60 = vpack.c.bf16 %v2496_v59, %v2496_v59 }
 0x2c8   :  { %2970 = vmatprep.mubr.bf16.mxu0 %v2500_v60 }
 0x2c9   :  { %2971 = vmatmul.mubr.bf16.vlgmr.msra.gmra.mrb[4].mxu0 %v2499_v61 }
 0x39c   :  { %v2972_v5 = vpop.f32.mrb[4].mxu0 }
 0x39d   :  { %v3411_v1 = vadd.f32 %v2972_v5, %v2570_v3  ;;  %v2974_v6 = vpop.f32.mrb[5].mxu0 }
 0x39e   :  { %v3412_v9 = vadd.f32 %v2974_v6, %v2574_v63  ;;  %v2976_v10 = vpop.f32.mrb[6].mxu0 }
 0x39f   :  { %v2979_v12 = vmax.f32 %v3411_v1, 0.0  ;;  %v2977_v14 = vpop.f32.mrb[7].mxu0 }
 0x3a0   :  { %v2980_v15 = vmax.f32 %v3412_v9, 0.0 }
 0x3a1   :  { %v2993_v16 = vmul.f32 %v2986_v8, %v2979_v12 }
 0x3a2   :  { %v2994_v17 = vmul.f32 %v2990_v11, %v2980_v15 }
 0x3a4   :  { %v2995_v20 = vadd.f32 %v2994_v17, %v2993_v16 }
 0x3a6   :  { %2996 = vadd.xlane.f32.xlu0 %v2995_v20 }
 0x433   :  { %v2997_v24 = vpop.xlane.xlu0 %2996 }
 0x434   :  { %v3000_v25 = vadd.f32 %v2999_v23, %v2997_v24 }
 0x436   :  { %3002 = vst.msk [vmem:[%s4402_s7] sm:$0xff] %vm3001_vm0, %v3000_v25 }
 0x437   :  { %3007 = vsyncpa [#allocation4], 1 }
 0x438   :  { %3008 = vsyncpa [#allocation6], 1 }
 0x439   :  { %3009 = vsyncpa [#allocation9], 1 }
 0x43a   :  { %3010 = vsyncpa [#allocation12], 1 }

</bundles_post_ra>
